<compile_context>
chip_gen: v5e
topology: v5e:2x2
jax: 0.10.0
libtpu: 0.0.40
codegen_flags: <defaults>
</compile_context>

<pallas_src>
import jax
import jax.numpy as jnp
from jax.experimental import pallas as pl
from jax.experimental.pallas import tpu as pltpu

IN_DIM = 28 * 28          # 784
H1_DIM = 512
H2_DIM = 256
OUT_DIM = 10
OUT_PAD = 128             # lane-dense padded head width (full lane width, no masked vst)
NEG_BIG = -1e30           # padded-bias value: exp(NEG_BIG - max) == 0 in f32

VMEM_LIMIT_BYTES = 48 << 20


def _cdiv(a, b):
    return -(-a // b)


def _round_up(n, m):
    return _cdiv(n, m) * m


def _default_tb():
    """Batch-tile target per chip generation (perf review: v6e/v7x want 2048)."""
    try:
        kind = jax.devices()[0].device_kind.lower()
    except Exception:
        return 1024
    if any(tag in kind for tag in ("v6", "v7", "7x")):
        return 2048
    # v5e & older: MXU step is already long vs. per-step overhead; keep VMEM modest.
    return 512


def _choose_tiling(B, tb_target):
    """Pick the tile count first so pad waste is bounded to <8 rows per tile."""
    num_tiles = max(1, _cdiv(B, tb_target))
    # Megacore (v7x): with >1 tile, keep the tile count even so the two
    # TensorCores get equal shares of the "parallel" grid axis.
    if num_tiles > 1 and num_tiles % 2 == 1:
        num_tiles += 1
    tb = _round_up(_cdiv(B, num_tiles), 8)
    return tb, num_tiles * tb


def mlp_kernel(x_ref, w1_ref, b1_ref, w2_ref, b2_ref, w3_ref, b3_ref, o_ref):
    # In-kernel cast of the streamed x tile to bf16 (VPU work hidden under MXU).
    x = x_ref[...].astype(jnp.bfloat16)
    # fc1 (bf16 MXU operands, f32 accumulate) + bias + relu
    h1 = jnp.dot(x, w1_ref[...], preferred_element_type=jnp.float32)
    h1 = jnp.maximum(h1 + b1_ref[...], 0.0).astype(jnp.bfloat16)
    # fc2
    h2 = jnp.dot(h1, w2_ref[...], preferred_element_type=jnp.float32)
    h2 = jnp.maximum(h2 + b2_ref[...], 0.0).astype(jnp.bfloat16)
    # fc3 on the 128-wide padded head (padded columns carry bias = -1e30)
    logits = jnp.dot(h2, w3_ref[...], preferred_element_type=jnp.float32)
    logits = logits + b3_ref[...]
    # log_softmax over the padded 128 lanes; padded lanes contribute exp() == 0
    m = jnp.max(logits, axis=-1, keepdims=True)
    shifted = logits - m
    lse = jnp.log(jnp.sum(jnp.exp(shifted), axis=-1, keepdims=True))
    o_ref[...] = (shifted - lse).astype(o_ref.dtype)


def prepare_params(params):
    """One-time weight/bias prep (hoisted off the per-forward path)."""
    w1, b1, w2, b2, w3, b3 = params
    w1_bf = w1.astype(jnp.bfloat16)
    w2_bf = w2.astype(jnp.bfloat16)
    # Pad the head to 128 lanes: zero weight columns, -1e30 bias columns.
    w3_pad = jnp.zeros((H2_DIM, OUT_PAD), jnp.bfloat16).at[:, :OUT_DIM].set(
        w3.astype(jnp.bfloat16))
    b1_f = b1.reshape(1, H1_DIM).astype(jnp.float32)
    b2_f = b2.reshape(1, H2_DIM).astype(jnp.float32)
    b3_pad = jnp.full((1, OUT_PAD), NEG_BIG, jnp.float32).at[:, :OUT_DIM].set(
        b3.reshape(1, OUT_DIM).astype(jnp.float32))
    return (w1_bf, b1_f, w2_bf, b2_f, w3_pad, b3_pad)


def mlp_forward(x, prepped_params, *, tb=None):
    """x: (B, 1, 28, 28) or (B, 784), any float dtype. Returns (B, 10) f32 log-probs."""
    w1_bf, b1_f, w2_bf, b2_f, w3_pad, b3_pad = prepped_params

    x2d = x.reshape(-1, IN_DIM)          # keep native dtype; cast happens in-kernel
    B = x2d.shape[0]

    if tb is None:
        tb = _default_tb()
    TB, B_pad = _choose_tiling(B, tb)
    if B_pad != B:
        # Only for ragged B; tile sizing above bounds this to <8 rows per tile.
        x2d = jnp.pad(x2d, ((0, B_pad - B), (0, 0)))

    grid = (B_pad // TB,)

    # Weight/bias specs use constant index_maps, so Pallas keeps one VMEM-resident
    # copy across all grid steps (no per-step re-fetch).
    out_pad = pl.pallas_call(
        mlp_kernel,
        out_shape=jax.ShapeDtypeStruct((B_pad, OUT_PAD), jnp.bfloat16),
        grid=grid,
        in_specs=[
            pl.BlockSpec((TB, IN_DIM), lambda i: (i, 0)),        # x tile (streamed, native dtype)
            pl.BlockSpec((IN_DIM, H1_DIM), lambda i: (0, 0)),    # w1 (resident)
            pl.BlockSpec((1, H1_DIM), lambda i: (0, 0)),         # b1 (resident)
            pl.BlockSpec((H1_DIM, H2_DIM), lambda i: (0, 0)),    # w2 (resident)
            pl.BlockSpec((1, H2_DIM), lambda i: (0, 0)),         # b2 (resident)
            pl.BlockSpec((H2_DIM, OUT_PAD), lambda i: (0, 0)),   # w3 padded (resident)
            pl.BlockSpec((1, OUT_PAD), lambda i: (0, 0)),        # b3 padded (resident)
        ],
        out_specs=pl.BlockSpec((TB, OUT_PAD), lambda i: (i, 0)),  # lane-dense bf16 out
        compiler_params=pltpu.CompilerParams(
            dimension_semantics=("parallel",),                    # megacore split on v7x
            vmem_limit_bytes=VMEM_LIMIT_BYTES,
        ),
    )(x2d, w1_bf, b1_f, w2_bf, b2_f, w3_pad, b3_pad)

    # Tiny (B,10) slice+cast; downstream consumers could fuse this instead.
    return out_pad[:B, :OUT_DIM].astype(jnp.float32)


def init_params(key):
    """Deterministic init mirroring nn.Linear shapes (stored transposed: (in, out))."""
    dims = [(IN_DIM, H1_DIM), (H1_DIM, H2_DIM), (H2_DIM, OUT_DIM)]
    params = []
    for i, (fan_in, fan_out) in enumerate(dims):
        kw, kb, key = jax.random.split(jax.random.fold_in(key, i), 3)
        bound = 1.0 / jnp.sqrt(fan_in)
        w = jax.random.uniform(kw, (fan_in, fan_out), jnp.float32, -bound, bound)
        b = jax.random.uniform(kb, (1, fan_out), jnp.float32, -bound, bound)
        params += [w, b]
    return tuple(params)


def mlp_reference(x, params):
    """Pure-JAX f32 reference for correctness checking."""
    w1, b1, w2, b2, w3, b3 = params
    h = x.reshape(-1, IN_DIM).astype(jnp.float32)
    h = jnp.maximum(h @ w1 + b1, 0.0)
    h = jnp.maximum(h @ w2 + b2, 0.0)
    logits = h @ w3 + b3
    return jax.nn.log_softmax(logits, axis=1)


if __name__ == "__main__":
    key = jax.random.PRNGKey(0)
    pkey, xkey = jax.random.split(key)
    params = init_params(pkey)
    prepped = prepare_params(params)          # one-time prep, off the forward path

    # Small batch of MNIST-shaped inputs (B, C=1, H=28, W=28), like PyTorch NCHW.
    x = jax.random.normal(xkey, (2, 1, 28, 28), dtype=jnp.float32)

    out = mlp_forward(x, prepped)
    out = jax.block_until_ready(out)

    ref = mlp_reference(x, params)
    assert out.shape == (2, 10), out.shape
    # bf16 MXU operands / bf16 output store (f32 accumulation) -> compare against
    # the f32 reference at bf16-appropriate tolerance.
    assert jnp.allclose(out, ref, atol=3e-2, rtol=3e-2), "mismatch vs reference"
    # Log-probabilities must still (approximately) normalize despite bf16 output.
    assert jnp.allclose(jnp.sum(jnp.exp(out), axis=1), 1.0, atol=2e-2)

    print("KERNEL_OK")
</pallas_src>

<mosaic_0001>
module attributes {stable_mosaic.version = 11 : i64} {
  func.func @mlp_kernel(%arg0: i32, %arg1: memref<8x784xf32, #tpu.memory_space<vmem>>, %arg2: memref<784x512xbf16, #tpu.memory_space<vmem>>, %arg3: memref<1x512xf32, #tpu.memory_space<vmem>>, %arg4: memref<512x256xbf16, #tpu.memory_space<vmem>>, %arg5: memref<1x256xf32, #tpu.memory_space<vmem>>, %arg6: memref<256x128xbf16, #tpu.memory_space<vmem>>, %arg7: memref<1x128xf32, #tpu.memory_space<vmem>>, %arg8: memref<8x128xbf16, #tpu.memory_space<vmem>>) attributes {dimension_semantics = [#tpu.dimension_semantics<parallel>], iteration_bounds = array<i64: 1>, scalar_prefetch = 0 : i64, scratch_operands = 0 : i64, tpu.core_type = #tpu.core_type<tc>, window_params = [{transform_indices = @transform_0, window_bounds = array<i64: 8, 784>}, {pipeline_mode = #tpu.pipeline_mode<synchronous>, transform_indices = @transform_1, window_bounds = array<i64: 784, 512>}, {pipeline_mode = #tpu.pipeline_mode<synchronous>, transform_indices = @transform_2, window_bounds = array<i64: 1, 512>}, {pipeline_mode = #tpu.pipeline_mode<synchronous>, transform_indices = @transform_3, window_bounds = array<i64: 512, 256>}, {pipeline_mode = #tpu.pipeline_mode<synchronous>, transform_indices = @transform_4, window_bounds = array<i64: 1, 256>}, {pipeline_mode = #tpu.pipeline_mode<synchronous>, transform_indices = @transform_5, window_bounds = array<i64: 256, 128>}, {pipeline_mode = #tpu.pipeline_mode<synchronous>, transform_indices = @transform_6, window_bounds = array<i64: 1, 128>}, {transform_indices = @transform_7, window_bounds = array<i64: 8, 128>}]} {
    %c0 = arith.constant 0 : index
    %c0_0 = arith.constant 0 : index
    %0 = vector.load %arg1[%c0, %c0_0] : memref<8x784xf32, #tpu.memory_space<vmem>>, vector<8x784xf32>
    %1 = arith.truncf %0 : vector<8x784xf32> to vector<8x784xbf16>
    %c0_1 = arith.constant 0 : index
    %c0_2 = arith.constant 0 : index
    %2 = vector.load %arg2[%c0_1, %c0_2] : memref<784x512xbf16, #tpu.memory_space<vmem>>, vector<784x512xbf16>
    %cst = arith.constant dense<0.000000e+00> : vector<8x512xf32>
    %3 = tpu.matmul %1, %2, %cst {dimension_numbers = #tpu.dot_dimension_numbers<[1], [0], [0], [1], [0, 0, 1, 1], [], []>} : vector<8x784xbf16>, vector<784x512xbf16>, vector<8x512xf32> -> vector<8x512xf32>
    %c0_3 = arith.constant 0 : index
    %c0_4 = arith.constant 0 : index
    %4 = vector.load %arg3[%c0_3, %c0_4] : memref<1x512xf32, #tpu.memory_space<vmem>>, vector<1x512xf32>
    %5 = vector.broadcast %4 : vector<1x512xf32> to vector<8x512xf32>
    %6 = arith.addf %3, %5 : vector<8x512xf32>
    %cst_5 = arith.constant 0.000000e+00 : f32
    %7 = vector.broadcast %cst_5 : f32 to vector<8x512xf32>
    %8 = arith.maximumf %6, %7 : vector<8x512xf32>
    %9 = arith.truncf %8 : vector<8x512xf32> to vector<8x512xbf16>
    %c0_6 = arith.constant 0 : index
    %c0_7 = arith.constant 0 : index
    %10 = vector.load %arg4[%c0_6, %c0_7] : memref<512x256xbf16, #tpu.memory_space<vmem>>, vector<512x256xbf16>
    %cst_8 = arith.constant dense<0.000000e+00> : vector<8x256xf32>
    %11 = tpu.matmul %9, %10, %cst_8 {dimension_numbers = #tpu.dot_dimension_numbers<[1], [0], [0], [1], [0, 0, 1, 1], [], []>} : vector<8x512xbf16>, vector<512x256xbf16>, vector<8x256xf32> -> vector<8x256xf32>
    %c0_9 = arith.constant 0 : index
    %c0_10 = arith.constant 0 : index
    %12 = vector.load %arg5[%c0_9, %c0_10] : memref<1x256xf32, #tpu.memory_space<vmem>>, vector<1x256xf32>
    %13 = vector.broadcast %12 : vector<1x256xf32> to vector<8x256xf32>
    %14 = arith.addf %11, %13 : vector<8x256xf32>
    %cst_11 = arith.constant 0.000000e+00 : f32
    %15 = vector.broadcast %cst_11 : f32 to vector<8x256xf32>
    %16 = arith.maximumf %14, %15 : vector<8x256xf32>
    %17 = arith.truncf %16 : vector<8x256xf32> to vector<8x256xbf16>
    %c0_12 = arith.constant 0 : index
    %c0_13 = arith.constant 0 : index
    %18 = vector.load %arg6[%c0_12, %c0_13] : memref<256x128xbf16, #tpu.memory_space<vmem>>, vector<256x128xbf16>
    %cst_14 = arith.constant dense<0.000000e+00> : vector<8x128xf32>
    %19 = tpu.matmul %17, %18, %cst_14 {dimension_numbers = #tpu.dot_dimension_numbers<[1], [0], [0], [1], [0, 0, 1, 1], [], []>} : vector<8x256xbf16>, vector<256x128xbf16>, vector<8x128xf32> -> vector<8x128xf32>
    %c0_15 = arith.constant 0 : index
    %c0_16 = arith.constant 0 : index
    %20 = vector.load %arg7[%c0_15, %c0_16] : memref<1x128xf32, #tpu.memory_space<vmem>>, vector<1x128xf32>
    %21 = vector.broadcast %20 : vector<1x128xf32> to vector<8x128xf32>
    %22 = arith.addf %19, %21 : vector<8x128xf32>
    %cst_17 = arith.constant dense<0xFF800000> : vector<8xf32>
    %23 = vector.multi_reduction <maximumf>, %22, %cst_17 [1] : vector<8x128xf32> to vector<8xf32>
    %24 = vector.shape_cast %23 : vector<8xf32> to vector<8x1xf32>
    %25 = vector.broadcast %24 : vector<8x1xf32> to vector<8x128xf32>
    %26 = arith.subf %22, %25 : vector<8x128xf32>
    %27 = math.exp %26 : vector<8x128xf32>
    %cst_18 = arith.constant dense<0.000000e+00> : vector<8xf32>
    %28 = vector.multi_reduction <add>, %27, %cst_18 [1] : vector<8x128xf32> to vector<8xf32>
    %29 = vector.shape_cast %28 : vector<8xf32> to vector<8x1xf32>
    %30 = math.log %29 : vector<8x1xf32>
    %31 = vector.broadcast %30 : vector<8x1xf32> to vector<8x128xf32>
    %32 = arith.subf %26, %31 : vector<8x128xf32>
    %33 = arith.truncf %32 : vector<8x128xf32> to vector<8x128xbf16>
    %c0_19 = arith.constant 0 : index
    %c0_20 = arith.constant 0 : index
    %34 = vector.load %arg8[%c0_19, %c0_20] : memref<8x128xbf16, #tpu.memory_space<vmem>>, vector<8x128xbf16>
    tpu.vector_store %arg8[%c0_19, %c0_20], %33 {strides = array<i32>} : memref<8x128xbf16, #tpu.memory_space<vmem>>, vector<8x128xbf16>,
    return
  }
  func.func @transform_0(%arg0: i32) -> (i32, i32) {
    %c0_i32 = arith.constant 0 : i32
    %c0_i32_0 = arith.constant 0 : i32
    return %arg0, %c0_i32 : i32, i32
  }
  func.func @transform_1(%arg0: i32) -> (i32, i32) {
    %c0_i32 = arith.constant 0 : i32
    %c0_i32_0 = arith.constant 0 : i32
    %c0_i32_1 = arith.constant 0 : i32
    return %c0_i32, %c0_i32_0 : i32, i32
  }
  func.func @transform_2(%arg0: i32) -> (i32, i32) {
    %c0_i32 = arith.constant 0 : i32
    %c0_i32_0 = arith.constant 0 : i32
    %c0_i32_1 = arith.constant 0 : i32
    return %c0_i32, %c0_i32_0 : i32, i32
  }
  func.func @transform_3(%arg0: i32) -> (i32, i32) {
    %c0_i32 = arith.constant 0 : i32
    %c0_i32_0 = arith.constant 0 : i32
    %c0_i32_1 = arith.constant 0 : i32
    return %c0_i32, %c0_i32_0 : i32, i32
  }
  func.func @transform_4(%arg0: i32) -> (i32, i32) {
    %c0_i32 = arith.constant 0 : i32
    %c0_i32_0 = arith.constant 0 : i32
    %c0_i32_1 = arith.constant 0 : i32
    return %c0_i32, %c0_i32_0 : i32, i32
  }
  func.func @transform_5(%arg0: i32) -> (i32, i32) {
    %c0_i32 = arith.constant 0 : i32
    %c0_i32_0 = arith.constant 0 : i32
    %c0_i32_1 = arith.constant 0 : i32
    return %c0_i32, %c0_i32_0 : i32, i32
  }
  func.func @transform_6(%arg0: i32) -> (i32, i32) {
    %c0_i32 = arith.constant 0 : i32
    %c0_i32_0 = arith.constant 0 : i32
    %c0_i32_1 = arith.constant 0 : i32
    return %c0_i32, %c0_i32_0 : i32, i32
  }
  func.func @transform_7(%arg0: i32) -> (i32, i32) {
    %c0_i32 = arith.constant 0 : i32
    %c0_i32_0 = arith.constant 0 : i32
    return %arg0, %c0_i32 : i32, i32
  }
}

</mosaic_0001>

<bundles_post_ra>
// kernel: tpu_custom_call.1
= control target key start
LH: loop header
LB: loop body
LE: loop exit
PB: predicated region body
PF: predicated region fallthrough
CT: control target
= control target key end

     0   :  { %12 = vsyncpa [#allocation3], 0  ;;  %s4062_s0 = inlined_call_operand.hbm [shape: f32[8,784], index: 0, kind: input, shape index: {}]   ;;  %s4063_s1 = inlined_call_operand.hbm [shape: bf16[784,512], index: 1, kind: input, shape index: {}]   ;;  %s4064_s2 = inlined_call_operand.hbm [shape: f32[1,512], index: 2, kind: input, shape index: {}]   ;;  %s4065_s3 = inlined_call_operand.hbm [shape: bf16[512,256], index: 3, kind: input, shape index: {}]   ;;  %s4066_s4 = inlined_call_operand.vmem [shape: f32[1,256], index: 4, kind: input, shape index: {}]   ;;  %s4067_s5 = inlined_call_operand.hbm [shape: bf16[256,128], index: 5, kind: input, shape index: {}]   ;;  %s4068_s6 = inlined_call_operand.vmem [shape: f32[1,128], index: 6, kind: input, shape index: {}]   ;;  %s4069_s7 = inlined_call_operand.hbm [shape: bf16[8,128], index: 7, kind: output, shape index: {}]  }
   0x1   :  { %13 = vsyncpa [#allocation6], 0 }
   0x2   :  { %14 = vsyncpa [#allocation9], 0  ;;  %s31_s26 = sshll.u32 %s4063_s1, 4  ;;  %s32_s26 = int_to_ptr.hbm [resolvable:$true] %s31_s26 }
   0x3   :  { %15 = vsyncpa [#allocation4], 0  ;;  %s3918_s27 = smov [#allocation5]   ;;  %s55_s8 = sshll.u32 %s4065_s3, 4  ;;  %s56_s8 = int_to_ptr.hbm [resolvable:$true] %s55_s8 }
   0x4   :  { %s33_s28 = sshll.u32 %s3918_s27, 4  ;;  %s3919_s9 = smov 256   ;;  %s34_s28 = int_to_ptr.vmem [resolvable:$true] %s33_s28 }
   0x5   :  { %s3920_s10 = smov 16   ;;  %s3921_s11 = smov [#allocation8]  }
   0x6   :  { %39 = dma.hbm_to_vmem [thread:$0]  %s32_s26, 25088, %s34_s28, [#allocation6], %s3919_s9, %s3919_s9, %s3920_s10  }
   0x7   :  { %s57_s12 = sshll.u32 %s3921_s11, 4  ;;  %s3922_s13 = smov 128   ;;  %s58_s12 = int_to_ptr.vmem [resolvable:$true] %s57_s12 }
   0x8   :  { %s3923_s14 = smov 8   ;;  %s21_s16 = sshll.u32 %s4062_s0, 4  ;;  %s22_s16 = int_to_ptr.hbm [resolvable:$true] %s21_s16 }
   0x9   :  { %63 = dma.hbm_to_vmem [thread:$0]  %s56_s8, 8192, %s58_s12, [#allocation9], %s3922_s13, %s3922_s13, %s3923_s14  }
   0xa   :  { %s3924_s17 = smov [#allocation2]   ;;  %s45_s20 = sshll.u32 %s4064_s2, 4  ;;  %s46_s20 = int_to_ptr.hbm [resolvable:$true] %s45_s20 }
   0xb   :  { %s23_s18 = sshll.u32 %s3924_s17, 4  ;;  %s3925_s21 = smov [#allocation7]   ;;  %s24_s18 = int_to_ptr.vmem [resolvable:$true] %s23_s18 }
   0xc   :  { %26 = dma.hbm_to_vmem [thread:$0]  %s22_s16, 896, %s24_s18, [#allocation3]  }
   0xd   :  { %s47_s22 = sshll.u32 %s3925_s21, 4  ;;  %s70_s25 = sshll.u32 %s4067_s5, 4  ;;  %s48_s22 = int_to_ptr.vmem [resolvable:$true] %s47_s22  ;;  %s71_s25 = int_to_ptr.hbm [resolvable:$true] %s70_s25 }
   0xe   :  { %50 = dma.hbm_to_vmem [thread:$0]  %s46_s20, 64, %s48_s22, [#allocation6]  }
   0xf   :  { %s3926_s0 = smov [#allocation10]   ;;  %s3927_s27 = smov 64  }
  0x10   :  { %s72_s26 = sshll.u32 %s3926_s0, 4  ;;  %s3928_s28 = smov 4   ;;  %s73_s26 = int_to_ptr.vmem [resolvable:$true] %s72_s26 }
  0x11   :  { %78 = dma.hbm_to_vmem [thread:$0]  %s71_s25, 2048, %s73_s26, [#allocation9], %s3927_s27, %s3927_s27, %s3928_s28  }
  0x12   :  { %3910 = dma.done.wait [#allocation3], 896  }
  0x13   :  { %3911 = vsyncadd [#allocation3], 4294966400 }
  0x14   :  { %3912 = dma.done.wait [#allocation6], 25152  }
  0x15   :  { %3913 = vsyncadd [#allocation6], 4294942144 }
  0x16   :  { %3914 = dma.done.wait [#allocation9], 10240  }
  0x17   :  { %3915 = vsyncadd [#allocation9], 4294957056  ;;  %v2479_v0 = vld [vmem:[#allocation5 + $0xe0] sm:$0xf]  ;;  %v3503_v1 = vld [vmem:[#allocation5 + $0xec] sm:$0xf0] }
  0x18   :  { %v2607_v2 = vld [vmem:[#allocation5 + $0x1e0] sm:$0xf]  ;;  %v2480_v3 = vor.u32 %v3503_v1, %v2479_v0  ;;  %v3535_v4 = vld [vmem:[#allocation5 + $0x1ec] sm:$0xf0]  ;;  %vm1302_vm0 = vcmask 130048   ;;  %s3929_s30 = smov [#allocation11]  }
  0x19   :  { %v2735_v5 = vld [vmem:[#allocation5 + $0x2e0] sm:$0xf]  ;;  %v3567_v6 = vld [vmem:[#allocation5 + $0x2ec] sm:$0xf0]  ;;  %v2608_v7 = vor.u32 %v3535_v4, %v2607_v2  ;;  %s2351_s8 = sshll.u32 %s3929_s30, 4  ;;  %s2353_s10 = sshll.u32 %s4069_s7, 4  ;;  %s2352_s8 = int_to_ptr.vmem [resolvable:$true] %s2351_s8  ;;  %s2354_s10 = int_to_ptr.hbm [resolvable:$true] %s2353_s10 }
  0x1a   :  { %v2736_v8 = vor.u32 %v3567_v6, %v2735_v5  ;;  %v2863_v9 = vld [vmem:[#allocation5 + $0x3e0] sm:$0xf]  ;;  %v3599_v10 = vld [vmem:[#allocation5 + $0x3ec] sm:$0xf0]  ;;  %1306 = vmatpush.bf16.msra.mxu0 %v2480_v3 }
  0x1b   :  { %v2463_v11 = vld [vmem:[#allocation5 + $0xc0] sm:$0xf]  ;;  %v2864_v12 = vor.u32 %v3599_v10, %v2863_v9  ;;  %v3499_v13 = vld [vmem:[#allocation5 + $0xcc] sm:$0xf0]  ;;  %1319 = vmatpush.bf16.msra.mxu1 %v2608_v7 }
  0x1c   :  { %v2591_v14 = vld [vmem:[#allocation5 + $0x1c0] sm:$0xf]  ;;  %v3531_v15 = vld [vmem:[#allocation5 + $0x1cc] sm:$0xf0]  ;;  %1332 = vmatpush.bf16.msra.mxu2 %v2736_v8  ;;  %v2464_v16 = vor.u32 %v3499_v13, %v2463_v11 }
  0x1d   :  { %v2592_v17 = vor.u32 %v3531_v15, %v2591_v14  ;;  %v2719_v18 = vld [vmem:[#allocation5 + $0x2c0] sm:$0xf]  ;;  %v3563_v19 = vld [vmem:[#allocation5 + $0x2cc] sm:$0xf0]  ;;  %1345 = vmatpush.bf16.msra.mxu3 %v2864_v12 }
  0x1e   :  { %v2847_v20 = vld [vmem:[#allocation5 + $0x3c0] sm:$0xf]  ;;  %v2720_v21 = vor.u32 %v3563_v19, %v2719_v18  ;;  %v3595_v22 = vld [vmem:[#allocation5 + $0x3cc] sm:$0xf0]  ;;  %1307 = vmatpush.bf16.msra.mxu0 %v2464_v16 }
  0x1f   :  { %v2447_v23 = vld [vmem:[#allocation5 + $0xa0] sm:$0xf]  ;;  %v3495_v24 = vld [vmem:[#allocation5 + $0xac] sm:$0xf0]  ;;  %v2848_v25 = vor.u32 %v3595_v22, %v2847_v20  ;;  %1320 = vmatpush.bf16.msra.mxu1 %v2592_v17 }
  0x20   :  { %v2575_v26 = vld [vmem:[#allocation5 + $0x1a0] sm:$0xf]  ;;  %v3527_v27 = vld [vmem:[#allocation5 + $0x1ac] sm:$0xf0]  ;;  %v2448_v29 = vor.u32 %v3495_v24, %v2447_v23  ;;  %1333 = vmatpush.bf16.msra.mxu2 %v2720_v21 }
  0x21   :  { %v2703_v28 = vld [vmem:[#allocation5 + $0x2a0] sm:$0xf]  ;;  %v3559_v30 = vld [vmem:[#allocation5 + $0x2ac] sm:$0xf0]  ;;  %v2576_v33 = vor.u32 %v3527_v27, %v2575_v26  ;;  %1346 = vmatpush.bf16.msra.mxu3 %v2848_v25 }
  0x22   :  { %v2831_v31 = vld [vmem:[#allocation5 + $0x3a0] sm:$0xf]  ;;  %v3591_v32 = vld [vmem:[#allocation5 + $0x3ac] sm:$0xf0]  ;;  %v2704_v34 = vor.u32 %v3559_v30, %v2703_v28  ;;  %1308 = vmatpush.bf16.msra.mxu0 %v2448_v29 }
  0x23   :  { %v2431_v35 = vld [vmem:[#allocation5 + $0x80] sm:$0xf]  ;;  %v3491_v36 = vld [vmem:[#allocation5 + $0x8c] sm:$0xf0]  ;;  %v2832_v38 = vor.u32 %v3591_v32, %v2831_v31  ;;  %1321 = vmatpush.bf16.msra.mxu1 %v2576_v33  ;;  %v3501_v33 = vld [vmem:[#allocation5 + $0xe4] sm:$0xf] }
  0x24   :  { %v2559_v37 = vld [vmem:[#allocation5 + $0x180] sm:$0xf]  ;;  %v3523_v39 = vld [vmem:[#allocation5 + $0x18c] sm:$0xf0]  ;;  %v2432_v44 = vor.u32 %v3491_v36, %v2431_v35  ;;  %1334 = vmatpush.bf16.msra.mxu2 %v2704_v34  ;;  %v2481_v34 = vld [vmem:[#allocation5 + $0xf0] sm:$0xf0] }
  0x25   :  { %v2687_v40 = vld [vmem:[#allocation5 + $0x280] sm:$0xf]  ;;  %v3555_v41 = vld [vmem:[#allocation5 + $0x28c] sm:$0xf0]  ;;  %v2560_v45 = vor.u32 %v3523_v39, %v2559_v37  ;;  %1347 = vmatpush.bf16.msra.mxu3 %v2832_v38  ;;  %v104_v35 = vld [vmem:[#allocation2 + $0x10] sm:$0xff] }
  0x26   :  { %v2815_v42 = vld [vmem:[#allocation5 + $0x380] sm:$0xf]  ;;  %v3587_v43 = vld [vmem:[#allocation5 + $0x38c] sm:$0xf0]  ;;  %v2688_v46 = vor.u32 %v3555_v41, %v2687_v40  ;;  %1309 = vmatpush.bf16.msra.mxu0 %v2432_v44  ;;  %v102_v40 = vld [vmem:[#allocation2] sm:$0xff] }
  0x27   :  { %v2415_v47 = vld [vmem:[#allocation5 + $0x60] sm:$0xf]  ;;  %v3487_v48 = vld [vmem:[#allocation5 + $0x6c] sm:$0xf0]  ;;  %v2816_v50 = vor.u32 %v3587_v43, %v2815_v42  ;;  %1322 = vmatpush.bf16.msra.mxu1 %v2560_v45  ;;  %v3533_v43 = vld [vmem:[#allocation5 + $0x1e4] sm:$0xf] }
  0x28   :  { %v2543_v49 = vld [vmem:[#allocation5 + $0x160] sm:$0xf]  ;;  %v3519_v51 = vld [vmem:[#allocation5 + $0x16c] sm:$0xf0]  ;;  %v2416_v56 = vor.u32 %v3487_v48, %v2415_v47  ;;  %1335 = vmatpush.bf16.msra.mxu2 %v2688_v46  ;;  %v2609_v44 = vld [vmem:[#allocation5 + $0x1f0] sm:$0xf0]  ;;  %v2484_v47 = vor.u32 %v3501_v33, %v2481_v34 }
  0x29   :  { %v2671_v52 = vld [vmem:[#allocation5 + $0x260] sm:$0xf]  ;;  %v3551_v53 = vld [vmem:[#allocation5 + $0x26c] sm:$0xf0]  ;;  %v2544_v57 = vor.u32 %v3519_v51, %v2543_v49  ;;  %1348 = vmatpush.bf16.msra.mxu3 %v2816_v50  ;;  %v3985_v51 = vpack.c.bf16 %v104_v35, %v104_v35  ;;  %v3517_v35 = vld [vmem:[#allocation5 + $0x164] sm:$0xf] }
  0x2a   :  { %v2799_v54 = vld [vmem:[#allocation5 + $0x360] sm:$0xf]  ;;  %v3583_v55 = vld [vmem:[#allocation5 + $0x36c] sm:$0xf0]  ;;  %v2672_v58 = vor.u32 %v3551_v53, %v2671_v52  ;;  %1310 = vmatpush.bf16.msra.mxu0 %v2416_v56  ;;  %v3497_v53 = vld [vmem:[#allocation5 + $0xc4] sm:$0xf] }
  0x2b   :  { %v2399_v59 = vld [vmem:[#allocation5 + $0x40] sm:$0xf]  ;;  %v3483_v60 = vld [vmem:[#allocation5 + $0x4c] sm:$0xf0]  ;;  %v2800_v62 = vor.u32 %v3583_v55, %v2799_v54  ;;  %1323 = vmatpush.bf16.msra.mxu1 %v2544_v57  ;;  %v2465_v54 = vld [vmem:[#allocation5 + $0xd0] sm:$0xf0]  ;;  %v3987_v55 = vpack.c.bf16 %v102_v40, %v102_v40 }
  0x2c   :  { %v2527_v61 = vld [vmem:[#allocation5 + $0x140] sm:$0xf]  ;;  %v3515_v63 = vld [vmem:[#allocation5 + $0x14c] sm:$0xf0]  ;;  %v2400_v4 = vor.u32 %v3483_v60, %v2399_v59  ;;  %1336 = vmatpush.bf16.msra.mxu2 %v2672_v58  ;;  %v2612_v59 = vor.u32 %v3533_v43, %v2609_v44  ;;  %v3481_v43 = vld [vmem:[#allocation5 + $0x44] sm:$0xf] }
  0x2d   :  { %v2655_v0 = vld [vmem:[#allocation5 + $0x240] sm:$0xf]  ;;  %v3547_v1 = vld [vmem:[#allocation5 + $0x24c] sm:$0xf0]  ;;  %v2528_v5 = vor.u32 %v3515_v63, %v2527_v61  ;;  %1349 = vmatpush.bf16.msra.mxu3 %v2800_v62  ;;  %v3529_v61 = vld [vmem:[#allocation5 + $0x1c4] sm:$0xf] }
  0x2e   :  { %v2783_v2 = vld [vmem:[#allocation5 + $0x340] sm:$0xf]  ;;  %v3579_v3 = vld [vmem:[#allocation5 + $0x34c] sm:$0xf0]  ;;  %v2656_v6 = vor.u32 %v3547_v1, %v2655_v0  ;;  %1311 = vmatpush.bf16.msra.mxu0 %v2400_v4  ;;  %v2593_v62 = vld [vmem:[#allocation5 + $0x1d0] sm:$0xf0]  ;;  %v2468_v0 = vor.u32 %v3497_v53, %v2465_v54 }
  0x2f   :  { %v2383_v7 = vld [vmem:[#allocation5 + $0x20] sm:$0xf]  ;;  %v3479_v8 = vld [vmem:[#allocation5 + $0x2c] sm:$0xf0]  ;;  %v2784_v10 = vor.u32 %v3579_v3, %v2783_v2  ;;  %1324 = vmatpush.bf16.msra.mxu1 %v2528_v5  ;;  %v2401_v44 = vld [vmem:[#allocation5 + $0x50] sm:$0xf0] }
  0x30   :  { %v2511_v9 = vld [vmem:[#allocation5 + $0x120] sm:$0xf]  ;;  %v3511_v11 = vld [vmem:[#allocation5 + $0x12c] sm:$0xf0]  ;;  %v2384_v16 = vor.u32 %v3479_v8, %v2383_v7  ;;  %1337 = vmatpush.bf16.msra.mxu2 %v2656_v6  ;;  %v3493_v6 = vld [vmem:[#allocation5 + $0xa4] sm:$0xf]  ;;  %v2596_v8 = vor.u32 %v3529_v61, %v2593_v62 }
  0x31   :  { %v2639_v12 = vld [vmem:[#allocation5 + $0x220] sm:$0xf]  ;;  %v3543_v13 = vld [vmem:[#allocation5 + $0x22c] sm:$0xf0]  ;;  %v2512_v20 = vor.u32 %v3511_v11, %v2511_v9  ;;  %1350 = vmatpush.bf16.msra.mxu3 %v2784_v10  ;;  %v2449_v7 = vld [vmem:[#allocation5 + $0xb0] sm:$0xf0] }
  0x32   :  { %v2767_v14 = vld [vmem:[#allocation5 + $0x320] sm:$0xf]  ;;  %v3575_v15 = vld [vmem:[#allocation5 + $0x32c] sm:$0xf0]  ;;  %v2640_v21 = vor.u32 %v3543_v13, %v2639_v12  ;;  %1312 = vmatpush.bf16.msra.mxu0 %v2384_v16  ;;  %v3525_v10 = vld [vmem:[#allocation5 + $0x1a4] sm:$0xf]  ;;  %v2452_v13 = vor.u32 %v3493_v6, %v2449_v7 }
  0x33   :  { %v2367_v17 = vld [vmem:[#allocation5] sm:$0xf]  ;;  %v3475_v18 = vld [vmem:[#allocation5 + $0xc] sm:$0xf0]  ;;  %v2768_v25 = vor.u32 %v3575_v15, %v2767_v14  ;;  %1325 = vmatpush.bf16.msra.mxu1 %v2512_v20  ;;  %v2577_v11 = vld [vmem:[#allocation5 + $0x1b0] sm:$0xf0] }
  0x34   :  { %v2495_v19 = vld [vmem:[#allocation5 + $0x100] sm:$0xf]  ;;  %v3507_v22 = vld [vmem:[#allocation5 + $0x10c] sm:$0xf0]  ;;  %v2368_v32 = vor.u32 %v3475_v18, %v2367_v17  ;;  %1338 = vmatpush.bf16.msra.mxu2 %v2640_v21  ;;  %v3489_v18 = vld [vmem:[#allocation5 + $0x84] sm:$0xf]  ;;  %v2580_v20 = vor.u32 %v3525_v10, %v2577_v11 }
  0x35   :  { %v2623_v23 = vld [vmem:[#allocation5 + $0x200] sm:$0xf]  ;;  %v3539_v24 = vld [vmem:[#allocation5 + $0x20c] sm:$0xf0]  ;;  %v2496_v36 = vor.u32 %v3507_v22, %v2495_v19  ;;  %1351 = vmatpush.bf16.msra.mxu3 %v2768_v25  ;;  %v2433_v19 = vld [vmem:[#allocation5 + $0x90] sm:$0xf0] }
  0x36   :  { %v2751_v26 = vld [vmem:[#allocation5 + $0x300] sm:$0xf]  ;;  %v3571_v27 = vld [vmem:[#allocation5 + $0x30c] sm:$0xf0]  ;;  %v2624_v37 = vor.u32 %v3539_v24, %v2623_v23  ;;  %1313 = vmatpush.bf16.msra.mxu0 %v2368_v32  ;;  %v3521_v22 = vld [vmem:[#allocation5 + $0x184] sm:$0xf]  ;;  %v2436_v25 = vor.u32 %v3489_v18, %v2433_v19 }
  0x37   :  { %v2991_v28 = vld [vmem:[#allocation5 + $0x4e0] sm:$0xf]  ;;  %v3631_v29 = vld [vmem:[#allocation5 + $0x4ec] sm:$0xf0]  ;;  %v2752_v41 = vor.u32 %v3571_v27, %v2751_v26  ;;  %1326 = vmatpush.bf16.msra.mxu1 %v2496_v36  ;;  %v2561_v23 = vld [vmem:[#allocation5 + $0x190] sm:$0xf0] }
  0x38   :  { %v3119_v30 = vld [vmem:[#allocation5 + $0x5e0] sm:$0xf]  ;;  %v3663_v31 = vld [vmem:[#allocation5 + $0x5ec] sm:$0xf0]  ;;  %v2992_v42 = vor.u32 %v3631_v29, %v2991_v28  ;;  %1339 = vmatpush.bf16.msra.mxu2 %v2624_v37  ;;  %v108_v32 = vld [vmem:[#allocation2 + $0x30] sm:$0xff]  ;;  %v2564_v33 = vor.u32 %v3521_v22, %v2561_v23 }
  0x39   :  { %v3135_v38 = vld [vmem:[#allocation5 + $0x600] sm:$0xf]  ;;  %v3667_v39 = vld [vmem:[#allocation5 + $0x60c] sm:$0xf0]  ;;  %v3120_v46 = vor.u32 %v3663_v31, %v3119_v30  ;;  %1352 = vmatpush.bf16.msra.mxu3 %v2752_v41  ;;  %1314 = vmatmul.bf16.vlgmr.msra.gmra.mxu0 %v3987_v55  ;;  %v3485_v30 = vld [vmem:[#allocation5 + $0x64] sm:$0xf] }
  0x3a   :  { %v105_v45 = vld [vmem:[#allocation2 + $0x18] sm:$0xff]  ;;  %v3627_v49 = vld [vmem:[#allocation5 + $0x4cc] sm:$0xf0]  ;;  %v3136_v56 = vor.u32 %v3667_v39, %v3135_v38  ;;  %1358 = vmatpush.bf16.msrb.mxu0 %v2992_v42  ;;  %v2417_v31 = vld [vmem:[#allocation5 + $0x70] sm:$0xf0] }
  0x3b   :  { %v2975_v48 = vld [vmem:[#allocation5 + $0x4c0] sm:$0xf]  ;;  %v3659_v52 = vld [vmem:[#allocation5 + $0x5cc] sm:$0xf0]  ;;  %v3989_v57 = vpack.c.bf16 %v105_v45, %v105_v45  ;;  %1371 = vmatpush.bf16.msrb.mxu1 %v3120_v46  ;;  %1340 = vmatmul.bf16.vlgmr.msra.gmra.mxu2 %v3985_v51  ;;  %v2545_v36 = vld [vmem:[#allocation5 + $0x170] sm:$0xf0]  ;;  %v2420_v38 = vor.u32 %v3485_v30, %v2417_v31  ;;  %v3997_v45 = vpack.c.bf16 %v108_v32, %v108_v32 }
  0x3c   :  { %v3103_v50 = vld [vmem:[#allocation5 + $0x5c0] sm:$0xf]  ;;  %v103_v58 = vld [vmem:[#allocation2 + $0x8] sm:$0xff]  ;;  %v2976_v60 = vor.u32 %v3627_v49, %v2975_v48  ;;  %1391 = vmatpush.bf16.msrb.mxu2 %v3136_v56  ;;  %v2548_v46 = vor.u32 %v3517_v35, %v2545_v36  ;;  %v3513_v48 = vld [vmem:[#allocation5 + $0x144] sm:$0xf] }
  0x3d   :  { %1397 = vmatpush.bf16.msrb.mxu3 %v2484_v47  ;;  %v3104_v63 = vor.u32 %v3659_v52, %v3103_v50  ;;  %v2959_v1 = vld [vmem:[#allocation5 + $0x4a0] sm:$0xf]  ;;  %v3623_v2 = vld [vmem:[#allocation5 + $0x4ac] sm:$0xf0]  ;;  %v3993_v4 = vpack.c.bf16 %v103_v58, %v103_v58  ;;  %v2529_v49 = vld [vmem:[#allocation5 + $0x150] sm:$0xf0]  ;;  %v2404_v52 = vor.u32 %v3481_v43, %v2401_v44 }
  0x3e   :  { %v3087_v3 = vld [vmem:[#allocation5 + $0x5a0] sm:$0xf]  ;;  %v3655_v5 = vld [vmem:[#allocation5 + $0x5ac] sm:$0xf0]  ;;  %1353 = vmatmul.bf16.vlgmr.msra.gmra.mxu3 %v3989_v57  ;;  %1359 = vmatpush.bf16.msrb.mxu0 %v2976_v60  ;;  %v2960_v9 = vor.u32 %v3623_v2, %v2959_v1  ;;  %v2385_v60 = vld [vmem:[#allocation5 + $0x30] sm:$0xf0]  ;;  %v2532_v61 = vor.u32 %v3513_v48, %v2529_v49 }
  0x3f   :  { %1372 = vmatpush.bf16.msrb.mxu1 %v3104_v63  ;;  %v3088_v12 = vor.u32 %v3655_v5, %v3087_v3  ;;  %v2943_v14 = vld [vmem:[#allocation5 + $0x480] sm:$0xf]  ;;  %v3619_v15 = vld [vmem:[#allocation5 + $0x48c] sm:$0xf0]  ;;  %v3509_v63 = vld [vmem:[#allocation5 + $0x124] sm:$0xf] }
  0x40   :  { %1410 = vmatpush.bf16.msra.mxu2 %v2612_v59  ;;  %v3071_v16 = vld [vmem:[#allocation5 + $0x580] sm:$0xf]  ;;  %1327 = vmatmul.bf16.vlgmr.msra.gmra.mxu1 %v3993_v4  ;;  %v3651_v17 = vld [vmem:[#allocation5 + $0x58c] sm:$0xf0]  ;;  %v2944_v21 = vor.u32 %v3619_v15, %v2943_v14  ;;  %v3477_v59 = vld [vmem:[#allocation5 + $0x24] sm:$0xf] }
  0x41   :  { %1398 = vmatpush.bf16.msrb.mxu3 %v2468_v0  ;;  %v3072_v24 = vor.u32 %v3651_v17, %v3071_v16  ;;  %v2927_v26 = vld [vmem:[#allocation5 + $0x460] sm:$0xf]  ;;  %v3615_v27 = vld [vmem:[#allocation5 + $0x46c] sm:$0xf0]  ;;  %v2513_v0 = vld [vmem:[#allocation5 + $0x130] sm:$0xf0]  ;;  %v2388_v3 = vor.u32 %v3477_v59, %v2385_v60 }
  0x42   :  { %1360 = vmatpush.bf16.msrb.mxu0 %v2960_v9  ;;  %v3055_v28 = vld [vmem:[#allocation5 + $0x560] sm:$0xf]  ;;  %v3647_v29 = vld [vmem:[#allocation5 + $0x56c] sm:$0xf0]  ;;  %v2928_v34 = vor.u32 %v3615_v27, %v2927_v26  ;;  %v2369_v9 = vld [vmem:[#allocation5 + $0x10] sm:$0xf0]  ;;  %v2516_v14 = vor.u32 %v3509_v63, %v2513_v0 }
  0x43   :  { %1373 = vmatpush.bf16.msrb.mxu1 %v3088_v12  ;;  %v3056_v37 = vor.u32 %v3647_v29, %v3055_v28  ;;  %v2911_v39 = vld [vmem:[#allocation5 + $0x440] sm:$0xf]  ;;  %v3611_v40 = vld [vmem:[#allocation5 + $0x44c] sm:$0xf0]  ;;  %v3565_v10 = vld [vmem:[#allocation5 + $0x2e4] sm:$0xf] }
  0x44   :  { %1411 = vmatpush.bf16.msra.mxu2 %v2596_v8  ;;  %v3039_v41 = vld [vmem:[#allocation5 + $0x540] sm:$0xf]  ;;  %v3643_v42 = vld [vmem:[#allocation5 + $0x54c] sm:$0xf0]  ;;  %v2912_v47 = vor.u32 %v3611_v40, %v2911_v39  ;;  %v3473_v8 = vld [vmem:[#allocation5 + $0x4] sm:$0xf] }
  0x45   :  { %1399 = vmatpush.bf16.msrb.mxu3 %v2452_v13  ;;  %v3040_v50 = vor.u32 %v3643_v42, %v3039_v41  ;;  %v2895_v53 = vld [vmem:[#allocation5 + $0x420] sm:$0xf]  ;;  %v3607_v54 = vld [vmem:[#allocation5 + $0x42c] sm:$0xf0]  ;;  %v2737_v11 = vld [vmem:[#allocation5 + $0x2f0] sm:$0xf0] }
  0x46   :  { %1361 = vmatpush.bf16.msrb.mxu0 %v2944_v21  ;;  %v3023_v56 = vld [vmem:[#allocation5 + $0x520] sm:$0xf]  ;;  %v3639_v58 = vld [vmem:[#allocation5 + $0x52c] sm:$0xf0]  ;;  %v2896_v62 = vor.u32 %v3607_v54, %v2895_v53  ;;  %v3597_v12 = vld [vmem:[#allocation5 + $0x3e4] sm:$0xf] }
  0x47   :  { %1374 = vmatpush.bf16.msrb.mxu1 %v3072_v24  ;;  %v2879_v1 = vld [vmem:[#allocation5 + $0x400] sm:$0xf]  ;;  %v3024_v2 = vor.u32 %v3639_v58, %v3023_v56  ;;  %v3603_v5 = vld [vmem:[#allocation5 + $0x40c] sm:$0xf0]  ;;  %v2865_v13 = vld [vmem:[#allocation5 + $0x3f0] sm:$0xf0]  ;;  %v2740_v24 = vor.u32 %v3565_v10, %v2737_v11 }
  0x48   :  { %1412 = vmatpush.bf16.msra.mxu2 %v2580_v20  ;;  %v3007_v6 = vld [vmem:[#allocation5 + $0x500] sm:$0xf]  ;;  %v3635_v7 = vld [vmem:[#allocation5 + $0x50c] sm:$0xf0]  ;;  %v2880_v15 = vor.u32 %v3603_v5, %v2879_v1  ;;  %v3629_v16 = vld [vmem:[#allocation5 + $0x4e4] sm:$0xf]  ;;  %v2372_v20 = vor.u32 %v3473_v8, %v2369_v9 }
  0x49   :  { %1400 = vmatpush.bf16.msrb.mxu3 %v2436_v25  ;;  %v2993_v17 = vld [vmem:[#allocation5 + $0x4f0] sm:$0xf0]  ;;  %v106_v18 = vld [vmem:[#allocation2 + $0x20] sm:$0xff]  ;;  %v3008_v19 = vor.u32 %v3635_v7, %v3007_v6  ;;  %v3505_v21 = vld [vmem:[#allocation5 + $0x104] sm:$0xf]  ;;  %v2868_v25 = vor.u32 %v3597_v12, %v2865_v13 }
  0x4a   :  { %1362 = vmatpush.bf16.msrb.mxu0 %v2928_v34  ;;  %v2497_v22 = vld [vmem:[#allocation5 + $0x110] sm:$0xf0]  ;;  %v3661_v26 = vld [vmem:[#allocation5 + $0x5e4] sm:$0xf]  ;;  %v2996_v29 = vor.u32 %v3629_v16, %v2993_v17  ;;  %v4001_v30 = vpack.c.bf16 %v106_v18, %v106_v18 }
  0x4b   :  { %1375 = vmatpush.bf16.msrb.mxu1 %v3056_v37  ;;  %3149 = vmatmul.msk.bf16.vlgmr.msrb.gmra.mxu2 %vm1302_vm0, %v3997_v45  ;;  %v107_v23 = vld [vmem:[#allocation2 + $0x28] sm:$0xff]  ;;  %v3561_v28 = vld [vmem:[#allocation5 + $0x2c4] sm:$0xf]  ;;  %v2500_v34 = vor.u32 %v3505_v21, %v2497_v22 }
  0x4c   :  { %1413 = vmatpush.bf16.msra.mxu2 %v2564_v33  ;;  %v3121_v27 = vld [vmem:[#allocation5 + $0x5f0] sm:$0xf0]  ;;  %v3593_v32 = vld [vmem:[#allocation5 + $0x3c4] sm:$0xf]  ;;  %v4003_v35 = vpack.c.bf16 %v107_v23, %v107_v23 }
  0x4d   :  { %1401 = vmatpush.bf16.msrb.mxu3 %v2420_v38  ;;  %v2721_v31 = vld [vmem:[#allocation5 + $0x2d0] sm:$0xf0]  ;;  %v3625_v36 = vld [vmem:[#allocation5 + $0x4c4] sm:$0xf]  ;;  %v3124_v38 = vor.u32 %v3661_v26, %v3121_v27 }
  0x4e   :  { %1363 = vmatpush.bf16.msrb.mxu0 %v2912_v47  ;;  %v2849_v33 = vld [vmem:[#allocation5 + $0x3d0] sm:$0xf0]  ;;  %v2724_v39 = vor.u32 %v3561_v28, %v2721_v31  ;;  %v3657_v41 = vld [vmem:[#allocation5 + $0x5c4] sm:$0xf] }
  0x4f   :  { %1376 = vmatpush.bf16.msrb.mxu1 %v3040_v50  ;;  %v2977_v37 = vld [vmem:[#allocation5 + $0x4d0] sm:$0xf0]  ;;  %v2852_v40 = vor.u32 %v3593_v32, %v2849_v33  ;;  %v3557_v43 = vld [vmem:[#allocation5 + $0x2a4] sm:$0xf] }
  0x50   :  { %1414 = vmatpush.bf16.msra.mxu2 %v2548_v46  ;;  %v3105_v42 = vld [vmem:[#allocation5 + $0x5d0] sm:$0xf0]  ;;  %v2980_v44 = vor.u32 %v3625_v36, %v2977_v37  ;;  %v3589_v47 = vld [vmem:[#allocation5 + $0x3a4] sm:$0xf] }
  0x51   :  { %1402 = vmatpush.bf16.msrb.mxu3 %v2404_v52  ;;  %v2705_v46 = vld [vmem:[#allocation5 + $0x2b0] sm:$0xf0]  ;;  %v3621_v49 = vld [vmem:[#allocation5 + $0x4a4] sm:$0xf]  ;;  %v3108_v52 = vor.u32 %v3657_v41, %v3105_v42 }
  0x52   :  { %1364 = vmatpush.bf16.msrb.mxu0 %v2896_v62  ;;  %v2833_v48 = vld [vmem:[#allocation5 + $0x3b0] sm:$0xf0]  ;;  %v2708_v53 = vor.u32 %v3557_v43, %v2705_v46  ;;  %v3653_v56 = vld [vmem:[#allocation5 + $0x5a4] sm:$0xf] }
  0x53   :  { %1377 = vmatpush.bf16.msrb.mxu1 %v3024_v2  ;;  %v2961_v50 = vld [vmem:[#allocation5 + $0x4b0] sm:$0xf0]  ;;  %v2836_v54 = vor.u32 %v3589_v47, %v2833_v48  ;;  %v3553_v59 = vld [vmem:[#allocation5 + $0x284] sm:$0xf] }
  0x54   :  { %1415 = vmatpush.bf16.msra.mxu2 %v2532_v61  ;;  %v3089_v58 = vld [vmem:[#allocation5 + $0x5b0] sm:$0xf0]  ;;  %v2964_v60 = vor.u32 %v3621_v49, %v2961_v50  ;;  %v3585_v62 = vld [vmem:[#allocation5 + $0x384] sm:$0xf] }
  0x55   :  { %1403 = vmatpush.bf16.msrb.mxu3 %v2388_v3  ;;  %v2689_v61 = vld [vmem:[#allocation5 + $0x290] sm:$0xf0]  ;;  %v3617_v0 = vld [vmem:[#allocation5 + $0x484] sm:$0xf]  ;;  %v3092_v2 = vor.u32 %v3653_v56, %v3089_v58  ;;  %v2487_v56 = vld [vmem:[#allocation5 + $0xe8] sm:$0xf] }
  0x56   :  { %1365 = vmatpush.bf16.msrb.mxu0 %v2880_v15  ;;  %v2817_v63 = vld [vmem:[#allocation5 + $0x390] sm:$0xf0]  ;;  %v2692_v3 = vor.u32 %v3553_v59, %v2689_v61  ;;  %v3649_v6 = vld [vmem:[#allocation5 + $0x584] sm:$0xf]  ;;  %v3504_v58 = vld [vmem:[#allocation5 + $0xf4] sm:$0xf0] }
  0x57   :  { %1378 = vmatpush.bf16.msrb.mxu1 %v3008_v19  ;;  %v2945_v1 = vld [vmem:[#allocation5 + $0x490] sm:$0xf0]  ;;  %v2820_v5 = vor.u32 %v3585_v62, %v2817_v63  ;;  %v3549_v8 = vld [vmem:[#allocation5 + $0x264] sm:$0xf]  ;;  %v2615_v59 = vld [vmem:[#allocation5 + $0x1e8] sm:$0xf] }
  0x58   :  { %1416 = vmatpush.bf16.msra.mxu2 %v2516_v14  ;;  %v3073_v7 = vld [vmem:[#allocation5 + $0x590] sm:$0xf0]  ;;  %v2948_v9 = vor.u32 %v3617_v0, %v2945_v1  ;;  %v3581_v11 = vld [vmem:[#allocation5 + $0x364] sm:$0xf]  ;;  %v3536_v61 = vld [vmem:[#allocation5 + $0x1f4] sm:$0xf0] }
  0x59   :  { %1404 = vmatpush.bf16.msrb.mxu3 %v2372_v20  ;;  %1366 = vmatmul.bf16.vlgmr.msrb.gmra.mxu0 %v4001_v30  ;;  %v2673_v10 = vld [vmem:[#allocation5 + $0x270] sm:$0xf0]  ;;  %v3613_v13 = vld [vmem:[#allocation5 + $0x464] sm:$0xf]  ;;  %v3076_v15 = vor.u32 %v3649_v6, %v3073_v7  ;;  %v2488_v6 = vor.u32 %v3504_v58, %v2487_v56  ;;  %v2871_v7 = vld [vmem:[#allocation5 + $0x3e8] sm:$0xf] }
  0x5a   :  { %1423 = vmatpush.bf16.msra.mxu0 %v2740_v24  ;;  %1379 = vmatmul.bf16.vlgmr.msrb.gmra.mxu1 %v4003_v35  ;;  %v2801_v12 = vld [vmem:[#allocation5 + $0x370] sm:$0xf0]  ;;  %v2676_v16 = vor.u32 %v3549_v8, %v2673_v10  ;;  %v3645_v18 = vld [vmem:[#allocation5 + $0x564] sm:$0xf]  ;;  %v3600_v8 = vld [vmem:[#allocation5 + $0x3f4] sm:$0xf0]  ;;  %v2616_v10 = vor.u32 %v3536_v61, %v2615_v59 }
  0x5b   :  { %1436 = vmatpush.bf16.msra.mxu1 %v2868_v25  ;;  %v2929_v14 = vld [vmem:[#allocation5 + $0x470] sm:$0xf0]  ;;  %v2804_v17 = vor.u32 %v3581_v11, %v2801_v12  ;;  %v3545_v20 = vld [vmem:[#allocation5 + $0x244] sm:$0xf]  ;;  %v3500_v11 = vld [vmem:[#allocation5 + $0xd4] sm:$0xf0] }
  0x5c   :  { %1417 = vmatpush.bf16.msra.mxu2 %v2500_v34  ;;  %1405 = vmatmul.bf16.vlgmr.msrb.gmra.mxu3 %v3987_v55  ;;  %v3057_v19 = vld [vmem:[#allocation5 + $0x570] sm:$0xf0]  ;;  %v2932_v21 = vor.u32 %v3613_v13, %v2929_v14  ;;  %v3577_v23 = vld [vmem:[#allocation5 + $0x344] sm:$0xf]  ;;  %v2743_v13 = vld [vmem:[#allocation5 + $0x2e8] sm:$0xf] }
  0x5d   :  { %1449 = vmatpush.bf16.msra.mxu3 %v2996_v29  ;;  %v2657_v22 = vld [vmem:[#allocation5 + $0x250] sm:$0xf0]  ;;  %v3609_v25 = vld [vmem:[#allocation5 + $0x444] sm:$0xf]  ;;  %v3060_v27 = vor.u32 %v3645_v18, %v3057_v19  ;;  %v3568_v14 = vld [vmem:[#allocation5 + $0x2f4] sm:$0xf0]  ;;  %v2872_v18 = vor.u32 %v3600_v8, %v2871_v7 }
  0x5e   :  { %1424 = vmatpush.bf16.msra.mxu0 %v2724_v39  ;;  %v2785_v24 = vld [vmem:[#allocation5 + $0x350] sm:$0xf0]  ;;  %v2660_v28 = vor.u32 %v3545_v20, %v2657_v22  ;;  %v3641_v31 = vld [vmem:[#allocation5 + $0x544] sm:$0xf]  ;;  %v2855_v20 = vld [vmem:[#allocation5 + $0x3c8] sm:$0xf] }
  0x5f   :  { %1437 = vmatpush.bf16.msra.mxu1 %v2852_v40  ;;  %1418 = vmatmul.bf16.vlgmr.msra.gmra.mxu2 %v3993_v4  ;;  %v2913_v26 = vld [vmem:[#allocation5 + $0x450] sm:$0xf0]  ;;  %v2788_v29 = vor.u32 %v3577_v23, %v2785_v24  ;;  %v3541_v33 = vld [vmem:[#allocation5 + $0x224] sm:$0xf]  ;;  %v2455_v22 = vld [vmem:[#allocation5 + $0xa8] sm:$0xf]  ;;  %v2744_v23 = vor.u32 %v3568_v14, %v2743_v13 }
  0x60   :  { %1462 = vmatpush.bf16.msrb.mxu2 %v3124_v38  ;;  %v3041_v32 = vld [vmem:[#allocation5 + $0x550] sm:$0xf0]  ;;  %v2916_v34 = vor.u32 %v3609_v25, %v2913_v26  ;;  %v3573_v37 = vld [vmem:[#allocation5 + $0x324] sm:$0xf]  ;;  %v3496_v25 = vld [vmem:[#allocation5 + $0xb4] sm:$0xf0] }
  0x61   :  { %1450 = vmatpush.bf16.msra.mxu3 %v2980_v44  ;;  %v2641_v36 = vld [vmem:[#allocation5 + $0x230] sm:$0xf0]  ;;  %v3605_v39 = vld [vmem:[#allocation5 + $0x424] sm:$0xf]  ;;  %v3044_v41 = vor.u32 %v3641_v31, %v3041_v32  ;;  %v2727_v26 = vld [vmem:[#allocation5 + $0x2c8] sm:$0xf]  ;;  %v2456_v32 = vor.u32 %v3496_v25, %v2455_v22 }
  0x62   :  { %1425 = vmatpush.bf16.msra.mxu0 %v2708_v53  ;;  %v2769_v38 = vld [vmem:[#allocation5 + $0x330] sm:$0xf0]  ;;  %v3637_v42 = vld [vmem:[#allocation5 + $0x524] sm:$0xf]  ;;  %v2644_v46 = vor.u32 %v3541_v33, %v2641_v36  ;;  %v2839_v33 = vld [vmem:[#allocation5 + $0x3a8] sm:$0xf] }
  0x63   :  { %1438 = vmatpush.bf16.msra.mxu1 %v2836_v54  ;;  %v2897_v40 = vld [vmem:[#allocation5 + $0x430] sm:$0xf0]  ;;  %v3537_v44 = vld [vmem:[#allocation5 + $0x204] sm:$0xf]  ;;  %v2772_v47 = vor.u32 %v3573_v37, %v2769_v38  ;;  %v2439_v36 = vld [vmem:[#allocation5 + $0x88] sm:$0xf] }
  0x64   :  { %1463 = vmatpush.bf16.msrb.mxu2 %v3108_v52  ;;  %v3025_v43 = vld [vmem:[#allocation5 + $0x530] sm:$0xf0]  ;;  %v3569_v49 = vld [vmem:[#allocation5 + $0x304] sm:$0xf]  ;;  %v2900_v52 = vor.u32 %v3605_v39, %v2897_v40  ;;  %v3492_v39 = vld [vmem:[#allocation5 + $0x94] sm:$0xf0] }
  0x65   :  { %1451 = vmatpush.bf16.msra.mxu3 %v2964_v60  ;;  %v2625_v48 = vld [vmem:[#allocation5 + $0x210] sm:$0xf0]  ;;  %v3601_v53 = vld [vmem:[#allocation5 + $0x404] sm:$0xf]  ;;  %v3028_v60 = vor.u32 %v3637_v42, %v3025_v43  ;;  %v2711_v40 = vld [vmem:[#allocation5 + $0x2a8] sm:$0xf] }
  0x66   :  { %1426 = vmatpush.bf16.msra.mxu0 %v2692_v3  ;;  %v2753_v50 = vld [vmem:[#allocation5 + $0x310] sm:$0xf0]  ;;  %v3665_v62 = vld [vmem:[#allocation5 + $0x604] sm:$0xf]  ;;  %v2628_v0 = vor.u32 %v3537_v44, %v2625_v48  ;;  %v2567_v42 = vld [vmem:[#allocation5 + $0x188] sm:$0xf] }
  0x67   :  { %1439 = vmatpush.bf16.msra.mxu1 %v2820_v5  ;;  %v2881_v54 = vld [vmem:[#allocation5 + $0x410] sm:$0xf0]  ;;  %v2756_v1 = vor.u32 %v3569_v49, %v2753_v50  ;;  %v3524_v43 = vld [vmem:[#allocation5 + $0x194] sm:$0xf0]  ;;  %v2423_v49 = vld [vmem:[#allocation5 + $0x68] sm:$0xf] }
  0x68   :  { %1464 = vmatpush.bf16.msrb.mxu2 %v3092_v2  ;;  %v3137_v63 = vld [vmem:[#allocation5 + $0x610] sm:$0xf0]  ;;  %v3633_v2 = vld [vmem:[#allocation5 + $0x504] sm:$0xf]  ;;  %v2884_v5 = vor.u32 %v3601_v53, %v2881_v54  ;;  %v3588_v48 = vld [vmem:[#allocation5 + $0x394] sm:$0xf0] }
  0x69   :  { %1452 = vmatpush.bf16.msra.mxu3 %v2948_v9  ;;  %v3009_v3 = vld [vmem:[#allocation5 + $0x510] sm:$0xf0]  ;;  %v2471_v9 = vld [vmem:[#allocation5 + $0xc8] sm:$0xf]  ;;  %v3140_v12 = vor.u32 %v3665_v62, %v3137_v63  ;;  %v3488_v53 = vld [vmem:[#allocation5 + $0x74] sm:$0xf0] }
  0x6a   :  { %1427 = vmatpush.bf16.msra.mxu0 %v2676_v16  ;;  %v2599_v16 = vld [vmem:[#allocation5 + $0x1c8] sm:$0xf]  ;;  %v2472_v19 = vor.u32 %v3500_v11, %v2471_v9  ;;  %v3556_v56 = vld [vmem:[#allocation5 + $0x294] sm:$0xf0]  ;;  %v2424_v61 = vor.u32 %v3488_v53, %v2423_v49 }
  0x6b   :  { %1440 = vmatpush.bf16.msra.mxu1 %v2804_v17  ;;  %v3532_v17 = vld [vmem:[#allocation5 + $0x1d4] sm:$0xf0]  ;;  %v2695_v54 = vld [vmem:[#allocation5 + $0x288] sm:$0xf] }
  0x6c   :  { %1465 = vmatpush.bf16.msrb.mxu2 %v3076_v15  ;;  %v3012_v15 = vor.u32 %v3633_v2, %v3009_v3  ;;  %v2600_v24 = vor.u32 %v3532_v17, %v2599_v16  ;;  %v2551_v58 = vld [vmem:[#allocation5 + $0x168] sm:$0xf]  ;;  %v3520_v59 = vld [vmem:[#allocation5 + $0x174] sm:$0xf0] }
  0x6d   :  { %1453 = vmatpush.bf16.msra.mxu3 %v2932_v21  ;;  %v3596_v21 = vld [vmem:[#allocation5 + $0x3d4] sm:$0xf0]  ;;  %v2807_v62 = vld [vmem:[#allocation5 + $0x368] sm:$0xf]  ;;  %v2552_v2 = vor.u32 %v3520_v59, %v2551_v58 }
  0x6e   :  { %1428 = vmatpush.bf16.msra.mxu0 %v2660_v28  ;;  %v2583_v28 = vld [vmem:[#allocation5 + $0x1a8] sm:$0xf]  ;;  %v2856_v31 = vor.u32 %v3596_v21, %v2855_v20  ;;  %v3584_v63 = vld [vmem:[#allocation5 + $0x374] sm:$0xf0] }
  0x6f   :  { %1441 = vmatpush.bf16.msra.mxu1 %v2788_v29  ;;  %v3528_v29 = vld [vmem:[#allocation5 + $0x1b4] sm:$0xf0]  ;;  %v2535_v7 = vld [vmem:[#allocation5 + $0x148] sm:$0xf]  ;;  %v2808_v9 = vor.u32 %v3584_v63, %v2807_v62 }
  0x70   :  { %1466 = vmatpush.bf16.msrb.mxu2 %v3060_v27  ;;  %v3564_v27 = vld [vmem:[#allocation5 + $0x2d4] sm:$0xf0]  ;;  %v2584_v38 = vor.u32 %v3528_v29, %v2583_v28  ;;  %v2791_v11 = vld [vmem:[#allocation5 + $0x348] sm:$0xf] }
  0x71   :  { %1454 = vmatpush.bf16.msra.mxu3 %v2916_v34  ;;  %v3592_v34 = vld [vmem:[#allocation5 + $0x3b4] sm:$0xf0]  ;;  %v2728_v37 = vor.u32 %v3564_v27, %v2727_v26  ;;  %v2391_v13 = vld [vmem:[#allocation5 + $0x28] sm:$0xf] }
  0x72   :  { %1429 = vmatpush.bf16.msra.mxu0 %v2644_v46  ;;  %v2840_v44 = vor.u32 %v3592_v34, %v2839_v33  ;;  %v2440_v46 = vor.u32 %v3492_v39, %v2439_v36  ;;  %v3484_v3 = vld [vmem:[#allocation5 + $0x54] sm:$0xf0]  ;;  %v2663_v17 = vld [vmem:[#allocation5 + $0x248] sm:$0xf] }
  0x73   :  { %1442 = vmatpush.bf16.msra.mxu1 %v2772_v47  ;;  %v2823_v47 = vld [vmem:[#allocation5 + $0x388] sm:$0xf]  ;;  %v3516_v8 = vld [vmem:[#allocation5 + $0x154] sm:$0xf0] }
  0x74   :  { %1467 = vmatpush.bf16.msrb.mxu2 %v3044_v41  ;;  %v3560_v41 = vld [vmem:[#allocation5 + $0x2b4] sm:$0xf0]  ;;  %v2775_v22 = vld [vmem:[#allocation5 + $0x328] sm:$0xf] }
  0x75   :  { %1455 = vmatpush.bf16.msra.mxu3 %v2900_v52  ;;  %v2712_v50 = vor.u32 %v3560_v41, %v2711_v40  ;;  %v2568_v52 = vor.u32 %v3524_v43, %v2567_v42  ;;  %v3480_v16 = vld [vmem:[#allocation5 + $0x34] sm:$0xf0]  ;;  %v2375_v25 = vld [vmem:[#allocation5 + $0x8] sm:$0xf] }
  0x76   :  { %1430 = vmatpush.bf16.msra.mxu0 %v2628_v0  ;;  %v2407_v0 = vld [vmem:[#allocation5 + $0x48] sm:$0xf]  ;;  %v3512_v20 = vld [vmem:[#allocation5 + $0x134] sm:$0xf0] }
  0x77   :  { %1443 = vmatpush.bf16.msra.mxu1 %v2756_v1  ;;  %v2696_v1 = vor.u32 %v3556_v56, %v2695_v54  ;;  %v3476_v26 = vld [vmem:[#allocation5 + $0x14] sm:$0xf0]  ;;  %v2503_v29 = vld [vmem:[#allocation5 + $0x108] sm:$0xf] }
  0x78   :  { %1468 = vmatpush.bf16.msrb.mxu2 %v3028_v60  ;;  %v2824_v60 = vor.u32 %v3588_v48, %v2823_v47  ;;  %v3508_v33 = vld [vmem:[#allocation5 + $0x114] sm:$0xf0]  ;;  %v2999_v34 = vld [vmem:[#allocation5 + $0x4e8] sm:$0xf]  ;;  %v2376_v41 = vor.u32 %v3476_v26, %v2375_v25  ;;  %v3490_v25 = vld [vmem:[#allocation5 + $0x8c] sm:$0xf] }
  0x79   :  { %1456 = vmatpush.bf16.msra.mxu3 %v2884_v5  ;;  %1431 = vmatmul.bf16.vlgmr.msra.gmra.mxu0 %v3985_v51  ;;  %v2679_v5 = vld [vmem:[#allocation5 + $0x268] sm:$0xf]  ;;  %v3632_v36 = vld [vmem:[#allocation5 + $0x4f4] sm:$0xf0]  ;;  %v2504_v47 = vor.u32 %v3508_v33, %v2503_v29  ;;  %v3526_v29 = vld [vmem:[#allocation5 + $0x1ac] sm:$0xf] }
  0x7a   :  { %1482 = vmatpush.bf16.msrb.mxu0 %v3140_v12  ;;  %1444 = vmatmul.bf16.vlgmr.msra.gmra.mxu1 %v3989_v57  ;;  %v3580_v12 = vld [vmem:[#allocation5 + $0x354] sm:$0xf0]  ;;  %v2759_v40 = vld [vmem:[#allocation5 + $0x308] sm:$0xf]  ;;  %v3000_v48 = vor.u32 %v3632_v36, %v2999_v34 }
  0x7b   :  { %1488 = vmatpush.bf16.msrb.mxu1 %v2488_v6  ;;  %v3552_v6 = vld [vmem:[#allocation5 + $0x274] sm:$0xf0]  ;;  %v2792_v21 = vor.u32 %v3580_v12, %v2791_v11  ;;  %v2983_v49 = vld [vmem:[#allocation5 + $0x4c8] sm:$0xf] }
  0x7c   :  { %1469 = vmatpush.bf16.msrb.mxu2 %v3012_v15  ;;  %1457 = vmatmul.bf16.vlgmr.msra.gmra.mxu3 %v4001_v30  ;;  %v2680_v14 = vor.u32 %v3552_v6, %v2679_v5  ;;  %v2536_v15 = vor.u32 %v3516_v8, %v2535_v7  ;;  %v3664_v39 = vld [vmem:[#allocation5 + $0x5f4] sm:$0xf0]  ;;  %v3143_v56 = vld [vmem:[#allocation5 + $0x608] sm:$0xf]  ;;  %v3534_v5 = vld [vmem:[#allocation5 + $0x1ec] sm:$0xf] }
  0x7d   :  { %1501 = vmatpush.bf16.msrb.mxu3 %v2616_v10  ;;  %v2408_v10 = vor.u32 %v3484_v3, %v2407_v0  ;;  %v3572_v42 = vld [vmem:[#allocation5 + $0x314] sm:$0xf0]  ;;  %v3498_v0 = vld [vmem:[#allocation5 + $0xcc] sm:$0xf]  ;;  %v2617_v6 = vld [vmem:[#allocation5 + $0x1f8] sm:$0xf0] }
  0x7e   :  { %1514 = vmatpush.bf16.msra.mxu0 %v2744_v23  ;;  %v2392_v23 = vor.u32 %v3480_v16, %v2391_v13  ;;  %v3628_v54 = vld [vmem:[#allocation5 + $0x4d4] sm:$0xf0]  ;;  %v2760_v59 = vor.u32 %v3572_v42, %v2759_v40  ;;  %v2967_v8 = vld [vmem:[#allocation5 + $0x4a8] sm:$0xf]  ;;  %v3494_v13 = vld [vmem:[#allocation5 + $0xac] sm:$0xf] }
  0x7f   :  { %1489 = vmatpush.bf16.msrb.mxu1 %v2472_v19  ;;  %1470 = vmatmul.bf16.vlgmr.msrb.gmra.mxu2 %v4003_v35  ;;  %v2519_v19 = vld [vmem:[#allocation5 + $0x128] sm:$0xf]  ;;  %v3668_v58 = vld [vmem:[#allocation5 + $0x614] sm:$0xf0]  ;;  %v2457_v16 = vld [vmem:[#allocation5 + $0xb8] sm:$0xf0] }
  0x80   :  { %1527 = vmatpush.bf16.msra.mxu2 %v2872_v18  ;;  %v3548_v18 = vld [vmem:[#allocation5 + $0x254] sm:$0xf0]  ;;  %v2520_v28 = vor.u32 %v3512_v20, %v2519_v19  ;;  %v3144_v3 = vor.u32 %v3668_v58, %v3143_v56  ;;  %v2951_v20 = vld [vmem:[#allocation5 + $0x488] sm:$0xf]  ;;  %v2425_v42 = vld [vmem:[#allocation5 + $0x78] sm:$0xf0] }
  0x81   :  { %1502 = vmatpush.bf16.msrb.mxu3 %v2600_v24  ;;  %v3576_v24 = vld [vmem:[#allocation5 + $0x334] sm:$0xf0]  ;;  %v2664_v27 = vor.u32 %v3548_v18, %v2663_v17  ;;  %v3530_v17 = vld [vmem:[#allocation5 + $0x1cc] sm:$0xf]  ;;  %v2601_v18 = vld [vmem:[#allocation5 + $0x1d8] sm:$0xf0] }
  0x82   :  { %1515 = vmatpush.bf16.msra.mxu0 %v2728_v37  ;;  %v2776_v37 = vor.u32 %v3576_v24, %v2775_v22  ;;  %v3656_v11 = vld [vmem:[#allocation5 + $0x5b4] sm:$0xf0]  ;;  %v3079_v22 = vld [vmem:[#allocation5 + $0x588] sm:$0xf]  ;;  %v2460_v24 = vor.u32 %v3494_v13, %v2457_v16  ;;  %v2604_v26 = vor.u32 %v3530_v17, %v2601_v18  ;;  %v2409_v58 = vld [vmem:[#allocation5 + $0x58] sm:$0xf0] }
  0x83   :  { %1490 = vmatpush.bf16.msrb.mxu1 %v2456_v32  ;;  %v3544_v32 = vld [vmem:[#allocation5 + $0x234] sm:$0xf0]  ;;  %v2935_v33 = vld [vmem:[#allocation5 + $0x468] sm:$0xf]  ;;  %v2745_v16 = vld [vmem:[#allocation5 + $0x2f8] sm:$0xf0] }
  0x84   :  { %1528 = vmatpush.bf16.msra.mxu2 %v2856_v31  ;;  %v2647_v31 = vld [vmem:[#allocation5 + $0x228] sm:$0xf]  ;;  %v3616_v34 = vld [vmem:[#allocation5 + $0x474] sm:$0xf0]  ;;  %v3598_v18 = vld [vmem:[#allocation5 + $0x3ec] sm:$0xf] }
  0x85   :  { %1503 = vmatpush.bf16.msrb.mxu3 %v2584_v38  ;;  %v3127_v38 = vld [vmem:[#allocation5 + $0x5e8] sm:$0xf]  ;;  %v2648_v43 = vor.u32 %v3544_v32, %v2647_v31  ;;  %v2585_v31 = vld [vmem:[#allocation5 + $0x1b8] sm:$0xf0] }
  0x86   :  { %1516 = vmatpush.bf16.msra.mxu0 %v2712_v50  ;;  %v2631_v50 = vld [vmem:[#allocation5 + $0x208] sm:$0xf]  ;;  %v3128_v53 = vor.u32 %v3664_v39, %v3127_v38  ;;  %v3486_v39 = vld [vmem:[#allocation5 + $0x6c] sm:$0xf]  ;;  %v2588_v40 = vor.u32 %v3526_v29, %v2585_v31  ;;  %v2729_v31 = vld [vmem:[#allocation5 + $0x2d8] sm:$0xf0] }
  0x87   :  { %1491 = vmatpush.bf16.msrb.mxu1 %v2440_v46  ;;  %v2489_v46 = vld [vmem:[#allocation5 + $0xf8] sm:$0xf0]  ;;  %v3063_v36 = vld [vmem:[#allocation5 + $0x568] sm:$0xf] }
  0x88   :  { %1529 = vmatpush.bf16.msra.mxu2 %v2840_v44  ;;  %v3502_v44 = vld [vmem:[#allocation5 + $0xec] sm:$0xf]  ;;  %v3015_v13 = vld [vmem:[#allocation5 + $0x508] sm:$0xf] }
  0x89   :  { %1504 = vmatpush.bf16.msrb.mxu3 %v2568_v52  ;;  %3150 = vmatmul.msk.bf16.vlgmr.msrb.gmra.mxu0 %vm1302_vm0, %v3997_v45  ;;  %v3540_v52 = vld [vmem:[#allocation5 + $0x214] sm:$0xf0]  ;;  %v2492_v62 = vor.u32 %v3502_v44, %v2489_v46  ;;  %v2569_v44 = vld [vmem:[#allocation5 + $0x198] sm:$0xf0] }
  0x8a   :  { %1517 = vmatpush.bf16.msra.mxu0 %v2696_v1  ;;  %v2632_v63 = vor.u32 %v3540_v52, %v2631_v50  ;;  %v2984_v1 = vor.u32 %v3628_v54, %v2983_v49  ;;  %v3047_v49 = vld [vmem:[#allocation5 + $0x548] sm:$0xf]  ;;  %v3644_v50 = vld [vmem:[#allocation5 + $0x554] sm:$0xf0]  ;;  %v2428_v52 = vor.u32 %v3486_v39, %v2425_v42  ;;  %v3626_v39 = vld [vmem:[#allocation5 + $0x4cc] sm:$0xf] }
  0x8b   :  { %1492 = vmatpush.bf16.msrb.mxu1 %v2424_v61  ;;  %v3660_v61 = vld [vmem:[#allocation5 + $0x5d4] sm:$0xf0]  ;;  %v2985_v42 = vld [vmem:[#allocation5 + $0x4d8] sm:$0xf0] }
  0x8c   :  { %1530 = vmatpush.bf16.msra.mxu2 %v2824_v60  ;;  %v3111_v60 = vld [vmem:[#allocation5 + $0x5c8] sm:$0xf] }
  0x8d   :  { %1505 = vmatpush.bf16.msrb.mxu3 %v2552_v2  ;;  %v2473_v2 = vld [vmem:[#allocation5 + $0xd8] sm:$0xf0]  ;;  %v3112_v7 = vor.u32 %v3660_v61, %v3111_v60  ;;  %v3048_v61 = vor.u32 %v3644_v50, %v3047_v49 }
  0x8e   :  { %1518 = vmatpush.bf16.msra.mxu0 %v2680_v14  ;;  %v2476_v12 = vor.u32 %v3498_v0, %v2473_v2  ;;  %v2620_v14 = vor.u32 %v3534_v5, %v2617_v6  ;;  %v2553_v60 = vld [vmem:[#allocation5 + $0x178] sm:$0xf0]  ;;  %v3031_v0 = vld [vmem:[#allocation5 + $0x528] sm:$0xf] }
  0x8f   :  { %1493 = vmatpush.bf16.msrb.mxu1 %v2408_v10  ;;  %v3095_v10 = vld [vmem:[#allocation5 + $0x5a8] sm:$0xf]  ;;  %v2505_v49 = vld [vmem:[#allocation5 + $0x118] sm:$0xf0] }
  0x90   :  { %1531 = vmatpush.bf16.msra.mxu2 %v2808_v9  ;;  %v3624_v9 = vld [vmem:[#allocation5 + $0x4b4] sm:$0xf0]  ;;  %v3096_v19 = vor.u32 %v3656_v11, %v3095_v10  ;;  %v2887_v11 = vld [vmem:[#allocation5 + $0x408] sm:$0xf]  ;;  %v2841_v50 = vld [vmem:[#allocation5 + $0x3b8] sm:$0xf0] }
  0x91   :  { %1506 = vmatpush.bf16.msrb.mxu3 %v2536_v15  ;;  %v2968_v15 = vor.u32 %v3624_v9, %v2967_v8  ;;  %v3514_v8 = vld [vmem:[#allocation5 + $0x14c] sm:$0xf]  ;;  %v2537_v9 = vld [vmem:[#allocation5 + $0x158] sm:$0xf0] }
  0x92   :  { %1519 = vmatpush.bf16.msra.mxu0 %v2664_v27 }
  0x93   :  { %1494 = vmatpush.bf16.msrb.mxu1 %v2392_v23  ;;  %v3652_v23 = vld [vmem:[#allocation5 + $0x594] sm:$0xf0] }
  0x94   :  { %1532 = vmatpush.bf16.msra.mxu2 %v2792_v21  ;;  %v3620_v21 = vld [vmem:[#allocation5 + $0x494] sm:$0xf0]  ;;  %v3080_v32 = vor.u32 %v3652_v23, %v3079_v22  ;;  %v3474_v22 = vld [vmem:[#allocation5 + $0xc] sm:$0xf]  ;;  %v2377_v23 = vld [vmem:[#allocation5 + $0x18] sm:$0xf0] }
  0x95   :  { %1507 = vmatpush.bf16.msrb.mxu3 %v2520_v28  ;;  %v2952_v27 = vor.u32 %v3620_v21, %v2951_v20  ;;  %v2441_v28 = vld [vmem:[#allocation5 + $0x98] sm:$0xf0]  ;;  %v2540_v20 = vor.u32 %v3514_v8, %v2537_v9  ;;  %v3618_v8 = vld [vmem:[#allocation5 + $0x48c] sm:$0xf] }
  0x96   :  { %1520 = vmatpush.bf16.msra.mxu0 %v2648_v43  ;;  %v2444_v38 = vor.u32 %v3490_v25, %v2441_v28  ;;  %v3522_v43 = vld [vmem:[#allocation5 + $0x18c] sm:$0xf]  ;;  %v2953_v9 = vld [vmem:[#allocation5 + $0x498] sm:$0xf0] }
  0x97   :  { %1495 = vmatpush.bf16.msrb.mxu1 %v2376_v41  ;;  %v2936_v41 = vor.u32 %v3616_v34, %v2935_v33  ;;  %v2572_v54 = vor.u32 %v3522_v43, %v2569_v44  ;;  %v3562_v28 = vld [vmem:[#allocation5 + $0x2cc] sm:$0xf]  ;;  %v2521_v33 = vld [vmem:[#allocation5 + $0x138] sm:$0xf0]  ;;  %v2380_v34 = vor.u32 %v3474_v22, %v2377_v23 }
  0x98   :  { %1533 = vmatpush.bf16.msra.mxu2 %v2776_v37  ;;  %v3648_v37 = vld [vmem:[#allocation5 + $0x574] sm:$0xf0]  ;;  %v3558_v43 = vld [vmem:[#allocation5 + $0x2ac] sm:$0xf]  ;;  %v2713_v44 = vld [vmem:[#allocation5 + $0x2b8] sm:$0xf0] }
  0x99   :  { %1508 = vmatpush.bf16.msrb.mxu3 %v2504_v47  ;;  %v3064_v46 = vor.u32 %v3648_v37, %v3063_v36  ;;  %v2919_v47 = vld [vmem:[#allocation5 + $0x448] sm:$0xf]  ;;  %v3594_v36 = vld [vmem:[#allocation5 + $0x3cc] sm:$0xf]  ;;  %v2857_v37 = vld [vmem:[#allocation5 + $0x3d8] sm:$0xf0] }
  0x9a   :  { %1496 = vmatmul.bf16.vlgmr.msrb.gmra.mxu1 %v3987_v55  ;;  %1521 = vmatpush.bf16.msra.mxu0 %v2632_v63  ;;  %v3608_v63 = vld [vmem:[#allocation5 + $0x434] sm:$0xf0] }
  0x9b   :  { %1540 = vmatpush.bf16.msra.mxu1 %v3000_v48  ;;  %v3612_v48 = vld [vmem:[#allocation5 + $0x454] sm:$0xf0] }
  0x9c   :  { %1534 = vmatpush.bf16.msra.mxu2 %v2760_v59  ;;  %1509 = vmatmul.bf16.vlgmr.msrb.gmra.mxu3 %v3993_v4  ;;  %v2920_v56 = vor.u32 %v3612_v48, %v2919_v47  ;;  %v3518_v59 = vld [vmem:[#allocation5 + $0x16c] sm:$0xf] }
  0x9d   :  { %1553 = vmatpush.bf16.msra.mxu3 %v3128_v53  ;;  %1522 = vmatmul.bf16.vlgmr.msra.gmra.mxu0 %v3985_v51  ;;  %v3482_v53 = vld [vmem:[#allocation5 + $0x4c] sm:$0xf]  ;;  %v2556_v5 = vor.u32 %v3518_v59, %v2553_v60  ;;  %v2969_v60 = vld [vmem:[#allocation5 + $0x4b8] sm:$0xf0] }
  0x9e   :  { %1573 = vmatpush.bf16.msrb.mxu0 %v3144_v3  ;;  %v2412_v2 = vor.u32 %v3482_v53, %v2409_v58  ;;  %v3478_v3 = vld [vmem:[#allocation5 + $0x2c] sm:$0xf]  ;;  %v3129_v53 = vld [vmem:[#allocation5 + $0x5f8] sm:$0xf0] }
  0x9f   :  { %1541 = vmatpush.bf16.msra.mxu1 %v2984_v1  ;;  %1535 = vmatmul.bf16.vlgmr.msra.gmra.mxu2 %v3989_v57  ;;  %v3640_v1 = vld [vmem:[#allocation5 + $0x534] sm:$0xf0]  ;;  %v3590_v47 = vld [vmem:[#allocation5 + $0x3ac] sm:$0xf] }
  0xa0   :  { %1579 = vmatpush.bf16.msrb.mxu2 %v2492_v62  ;;  %v2903_v62 = vld [vmem:[#allocation5 + $0x428] sm:$0xf]  ;;  %v3032_v10 = vor.u32 %v3640_v1, %v3031_v0  ;;  %v3506_v48 = vld [vmem:[#allocation5 + $0x10c] sm:$0xf]  ;;  %v2697_v0 = vld [vmem:[#allocation5 + $0x298] sm:$0xf0] }
  0xa1   :  { %1554 = vmatpush.bf16.msra.mxu3 %v3112_v7  ;;  %v2904_v6 = vor.u32 %v3608_v63, %v2903_v62  ;;  %v2393_v7 = vld [vmem:[#allocation5 + $0x38] sm:$0xf0]  ;;  %v2508_v58 = vor.u32 %v3506_v48, %v2505_v49  ;;  %v3622_v59 = vld [vmem:[#allocation5 + $0x4ac] sm:$0xf]  ;;  %v4033_v49 = vld [vmem:[#allocation7] sm:$0xf] }
  0xa2   :  { %1592 = vmatpush.bf16.msra.mxu0 %v2620_v14  ;;  %v3636_v14 = vld [vmem:[#allocation5 + $0x514] sm:$0xf0]  ;;  %v2396_v17 = vor.u32 %v3478_v3, %v2393_v7  ;;  %v3554_v63 = vld [vmem:[#allocation5 + $0x28c] sm:$0xf] }
  0xa3   :  { %1542 = vmatpush.bf16.msra.mxu1 %v2968_v15  ;;  %v3566_v15 = vld [vmem:[#allocation5 + $0x2ec] sm:$0xf]  ;;  %v2700_v7 = vor.u32 %v3554_v63, %v2697_v0  ;;  %v3049_v0 = vld [vmem:[#allocation5 + $0x558] sm:$0xf0] }
  0xa4   :  { %1580 = vmatpush.bf16.msrb.mxu2 %v2476_v12  ;;  %v3604_v12 = vld [vmem:[#allocation5 + $0x414] sm:$0xf0]  ;;  %v2748_v25 = vor.u32 %v3566_v15, %v2745_v16  ;;  %v3586_v1 = vld [vmem:[#allocation5 + $0x38c] sm:$0xf]  ;;  %v2809_v15 = vld [vmem:[#allocation5 + $0x378] sm:$0xf0] }
  0xa5   :  { %1555 = vmatpush.bf16.msra.mxu3 %v3096_v19  ;;  %v2873_v19 = vld [vmem:[#allocation5 + $0x3f8] sm:$0xf0]  ;;  %v2888_v21 = vor.u32 %v3604_v12, %v2887_v11  ;;  %v3658_v3 = vld [vmem:[#allocation5 + $0x5cc] sm:$0xf] }
  0xa6   :  { %1593 = vmatpush.bf16.msra.mxu0 %v2604_v26  ;;  %v3630_v26 = vld [vmem:[#allocation5 + $0x4ec] sm:$0xf]  ;;  %v2876_v29 = vor.u32 %v3598_v18, %v2873_v19  ;;  %v2956_v18 = vor.u32 %v3618_v8, %v2953_v9 }
  0xa7   :  { %1543 = vmatpush.bf16.msra.mxu1 %v2952_v27  ;;  %v3001_v27 = vld [vmem:[#allocation5 + $0x4f8] sm:$0xf0]  ;;  %v3550_v12 = vld [vmem:[#allocation5 + $0x26c] sm:$0xf] }
  0xa8   :  { %1581 = vmatpush.bf16.msrb.mxu2 %v2460_v24  ;;  %v3016_v24 = vor.u32 %v3636_v14, %v3015_v13  ;;  %v3582_v13 = vld [vmem:[#allocation5 + $0x36c] sm:$0xf] }
  0xa9   :  { %1556 = vmatpush.bf16.msra.mxu3 %v3080_v32  ;;  %v3510_v32 = vld [vmem:[#allocation5 + $0x12c] sm:$0xf]  ;;  %v2812_v22 = vor.u32 %v3582_v13, %v2809_v15  ;;  %v3145_v15 = vld [vmem:[#allocation5 + $0x618] sm:$0xf0] }
  0xaa   :  { %1594 = vmatpush.bf16.msra.mxu0 %v2588_v40  ;;  %v2732_v40 = vor.u32 %v3562_v28, %v2729_v31  ;;  %v3654_v16 = vld [vmem:[#allocation5 + $0x5ac] sm:$0xf]  ;;  %v2793_v28 = vld [vmem:[#allocation5 + $0x358] sm:$0xf0] }
  0xab   :  { %1544 = vmatpush.bf16.msra.mxu1 %v2936_v41  ;;  %v2524_v41 = vor.u32 %v3510_v32, %v2521_v33  ;;  %v3081_v31 = vld [vmem:[#allocation5 + $0x598] sm:$0xf0]  ;;  %v3642_v63 = vld [vmem:[#allocation5 + $0x54c] sm:$0xf] }
  0xac   :  { %1582 = vmatpush.bf16.msrb.mxu2 %v2444_v38  ;;  %v3004_v38 = vor.u32 %v3630_v26, %v3001_v27  ;;  %v3578_v26 = vld [vmem:[#allocation5 + $0x34c] sm:$0xf] }
  0xad   :  { %1557 = vmatpush.bf16.msra.mxu3 %v3064_v46  ;;  %3151 = vmatmul.msk.bf16.vlgmr.msrb.gmra.mxu0 %vm1302_vm0, %v3997_v45  ;;  %v2860_v46 = vor.u32 %v3594_v36, %v2857_v37  ;;  %v2921_v36 = vld [vmem:[#allocation5 + $0x458] sm:$0xf0]  ;;  %v3602_v9 = vld [vmem:[#allocation5 + $0x40c] sm:$0xf] }
  0xae   :  { %1595 = vmatpush.bf16.msra.mxu0 %v2572_v54  ;;  %v2988_v54 = vor.u32 %v3626_v39, %v2985_v42  ;;  %v3574_v42 = vld [vmem:[#allocation5 + $0x32c] sm:$0xf] }
  0xaf   :  { %1545 = vmatpush.bf16.msra.mxu1 %v2920_v56  ;;  %v2716_v56 = vor.u32 %v3558_v43, %v2713_v44  ;;  %v2777_v43 = vld [vmem:[#allocation5 + $0x338] sm:$0xf0]  ;;  %v3646_v44 = vld [vmem:[#allocation5 + $0x56c] sm:$0xf] }
  0xb0   :  { %1583 = vmatpush.bf16.msrb.mxu2 %v2428_v52  ;;  %v3662_v52 = vld [vmem:[#allocation5 + $0x5ec] sm:$0xf] }
  0xb1   :  { %1558 = vmatpush.bf16.msra.mxu3 %v3048_v61  ;;  %v2844_v61 = vor.u32 %v3590_v47, %v2841_v50  ;;  %v3132_v62 = vor.u32 %v3662_v52, %v3129_v53  ;;  %v3606_v52 = vld [vmem:[#allocation5 + $0x42c] sm:$0xf]  ;;  %v2905_v53 = vld [vmem:[#allocation5 + $0x438] sm:$0xf0] }
  0xb2   :  { %1596 = vmatpush.bf16.msra.mxu0 %v2556_v5  ;;  %v3113_v5 = vld [vmem:[#allocation5 + $0x5d8] sm:$0xf0]  ;;  %v3666_v13 = vld [vmem:[#allocation5 + $0x60c] sm:$0xf] }
  0xb3   :  { %1546 = vmatpush.bf16.msra.mxu1 %v2904_v6  ;;  %v2972_v6 = vor.u32 %v3622_v59, %v2969_v60  ;;  %v3116_v11 = vor.u32 %v3658_v3, %v3113_v5  ;;  %v2633_v59 = vld [vmem:[#allocation5 + $0x218] sm:$0xf0]  ;;  %v3570_v60 = vld [vmem:[#allocation5 + $0x30c] sm:$0xf]  ;;  %v3275_v5 = vld [vmem:[#allocation8 + $0xf0] sm:$0xf] }
  0xb4   :  { %1584 = vmatpush.bf16.msrb.mxu2 %v2412_v2  ;;  %v2825_v2 = vld [vmem:[#allocation5 + $0x398] sm:$0xf0] }
  0xb5   :  { %1559 = vmatpush.bf16.msra.mxu3 %v3032_v10  ;;  %v2828_v10 = vor.u32 %v3586_v1, %v2825_v2  ;;  %v2908_v2 = vor.u32 %v3606_v52, %v2905_v53  ;;  %v3684_v3 = vld [vmem:[#allocation8 + $0x74] sm:$0xf0]  ;;  %v3179_v53 = vld [vmem:[#allocation8 + $0x30] sm:$0xf] }
  0xb6   :  { %1597 = vmatpush.bf16.msra.mxu0 %v2540_v20  ;;  %v4024_v14 = vpop.f32.mrf.mxu0  ;;  %v3614_v20 = vld [vmem:[#allocation5 + $0x46c] sm:$0xf] }
  0xb7   :  { %1547 = vmatpush.bf16.msra.mxu1 %v2888_v21  ;;  %v2937_v21 = vld [vmem:[#allocation5 + $0x478] sm:$0xf0] }
  0xb8   :  { %1585 = vmatpush.bf16.msrb.mxu2 %v2396_v17  ;;  %v3097_v17 = vld [vmem:[#allocation5 + $0x5b8] sm:$0xf0]  ;;  %v2940_v32 = vor.u32 %v3614_v20, %v2937_v21 }
  0xb9   :  { %1560 = vmatpush.bf16.msra.mxu3 %v3016_v24  ;;  %v3100_v23 = vor.u32 %v3654_v16, %v3097_v17  ;;  %v3546_v24 = vld [vmem:[#allocation5 + $0x24c] sm:$0xf] }
  0xba   :  { %1548 = vmatmul.bf16.vlgmr.msra.gmra.mxu1 %v4001_v30  ;;  %1598 = vmatpush.bf16.msra.mxu0 %v2524_v41  ;;  %v2649_v41 = vld [vmem:[#allocation5 + $0x238] sm:$0xf0] }
  0xbb   :  { %1605 = vmatpush.bf16.msrb.mxu1 %v2748_v25  ;;  %v2665_v25 = vld [vmem:[#allocation5 + $0x258] sm:$0xf0] }
  0xbc   :  { %1586 = vmatpush.bf16.msrb.mxu2 %v2380_v34  ;;  %1561 = vmatmul.bf16.vlgmr.msra.gmra.mxu3 %v4003_v35  ;;  %v2668_v33 = vor.u32 %v3546_v24, %v2665_v25  ;;  %v3610_v34 = vld [vmem:[#allocation5 + $0x44c] sm:$0xf]  ;;  %v3148_v24 = vor.u32 %v3666_v13, %v3145_v15  ;;  %v3267_v25 = vld [vmem:[#allocation8 + $0xe0] sm:$0xf] }
  0xbd   :  { %1618 = vmatpush.bf16.msrb.mxu3 %v2876_v29  ;;  %v4027_v27 = vpop.f32.mrf.mxu1  ;;  %v3650_v29 = vld [vmem:[#allocation5 + $0x58c] sm:$0xf]  ;;  %v2924_v48 = vor.u32 %v3610_v34, %v2921_v36  ;;  %v3195_v34 = vld [vmem:[#allocation8 + $0x50] sm:$0xf]  ;;  %v3680_v36 = vld [vmem:[#allocation8 + $0x54] sm:$0xf0] }
  0xbe   :  { %1599 = vmatpush.bf16.msra.mxu0 %v2508_v58  ;;  %v3084_v39 = vor.u32 %v3650_v29, %v3081_v31  ;;  %v1317_v47 = vpop.f32.mrf.mxu0  ;;  %v3155_v15 = vld [vmem:[#allocation8] sm:$0xf] }
  0xbf   :  { %1606 = vmatpush.bf16.msrb.mxu1 %v2732_v40  ;;  %1587 = vmatmul.bf16.vlgmr.msrb.gmra.mxu2 %v3987_v55  ;;  %v2681_v55 = vld [vmem:[#allocation5 + $0x278] sm:$0xf0]  ;;  %v3542_v40 = vld [vmem:[#allocation5 + $0x22c] sm:$0xf]  ;;  %v3251_v47 = vld [vmem:[#allocation8 + $0xc0] sm:$0xf] }
  0xc0   :  { %1631 = vmatpush.bf16.msra.mxu2 %v3004_v38  ;;  %v2684_v19 = vor.u32 %v3550_v12, %v2681_v55  ;;  %v2796_v38 = vor.u32 %v3578_v26, %v2793_v28  ;;  %v2652_v50 = vor.u32 %v3542_v40, %v2649_v41  ;;  %v3052_v55 = vor.u32 %v3642_v63, %v3049_v0  ;;  %v3698_v26 = vld [vmem:[#allocation8 + $0xe4] sm:$0xf0]  ;;  %v3259_v40 = vld [vmem:[#allocation8 + $0xd0] sm:$0xf] }
  0xc1   :  { %1619 = vmatpush.bf16.msrb.mxu3 %v2860_v46  ;;  %1600 = vmatmul.bf16.vlgmr.msra.gmra.mxu0 %v3993_v4  ;;  %v4029_v4 = vpop.f32.mrf.mxu2  ;;  %v4031_v37 = vpop.f32.mrf.mxu3  ;;  %v3065_v46 = vld [vmem:[#allocation5 + $0x578] sm:$0xf0]  ;;  %v3674_v63 = vld [vmem:[#allocation8 + $0x24] sm:$0xf0] }
  0xc2   :  { %1644 = vmatpush.bf16.msrb.mxu0 %v3132_v62  ;;  %v3068_v58 = vor.u32 %v3646_v44, %v3065_v46  ;;  %v3211_v62 = vld [vmem:[#allocation8 + $0x70] sm:$0xf]  ;;  %v3187_v44 = vld [vmem:[#allocation8 + $0x40] sm:$0xf] }
  0xc3   :  { %1607 = vmatpush.bf16.msrb.mxu1 %v2716_v56  ;;  %v2780_v56 = vor.u32 %v3574_v42, %v2777_v43  ;;  %v3212_v17 = vor.u32 %v3684_v3, %v3211_v62  ;;  %v3196_v43 = vor.u32 %v3680_v36, %v3195_v34  ;;  %v3697_v34 = vld [vmem:[#allocation8 + $0xe4] sm:$0xf]  ;;  %v3269_v36 = vld [vmem:[#allocation8 + $0xe8] sm:$0xf0] }
  0xc4   :  { %1632 = vmatpush.bf16.msra.mxu2 %v2988_v54  ;;  %v3538_v54 = vld [vmem:[#allocation5 + $0x20c] sm:$0xf] }
  0xc5   :  { %1620 = vmatpush.bf16.msrb.mxu3 %v2844_v61  ;;  %v2761_v61 = vld [vmem:[#allocation5 + $0x318] sm:$0xf0]  ;;  %v1330_v1 = vpop.f32.mrf.mxu1  ;;  %v2636_v8 = vor.u32 %v3538_v54, %v2633_v59 }
  0xc6   :  { %1645 = vmatpush.bf16.msrb.mxu0 %v3116_v11  ;;  %v314_v11 = vperm.slane %v4033_v49, 0  ;;  %v2764_v12 = vor.u32 %v3570_v60, %v2761_v61  ;;  %v3692_v59 = vld [vmem:[#allocation8 + $0xb4] sm:$0xf0]  ;;  %v3235_v1 = vld [vmem:[#allocation8 + $0xa0] sm:$0xf] }
  0xc7   :  { %1608 = vmatpush.bf16.msrb.mxu1 %v2700_v7 }
  0xc8   :  { %1633 = vmatpush.bf16.msra.mxu2 %v2972_v6  ;;  %v3700_v6 = vld [vmem:[#allocation8 + $0xf4] sm:$0xf0]  ;;  %v1316_v28 = vadd.f32 %v4024_v14, %v314_v11 }
  0xc9   :  { %1621 = vmatpush.bf16.msrb.mxu3 %v2828_v10  ;;  %v1343_v7 = vpop.f32.mrf.mxu2  ;;  %v2889_v10 = vld [vmem:[#allocation5 + $0x418] sm:$0xf0]  ;;  %v1356_v16 = vpop.f32.mrf.mxu3  ;;  %v3276_v20 = vor.u32 %v3700_v6, %v3275_v5  ;;  %v3163_v6 = vld [vmem:[#allocation8 + $0x10] sm:$0xf] }
  0xca   :  { %1646 = vmatpush.bf16.msrb.mxu0 %v3100_v23  ;;  %v2892_v21 = vor.u32 %v3602_v9, %v2889_v10  ;;  %v3682_v23 = vld [vmem:[#allocation8 + $0x64] sm:$0xf0]  ;;  %v3696_v14 = vld [vmem:[#allocation8 + $0xd4] sm:$0xf0]  ;;  %v1329_v41 = vadd.f32 %v4027_v27, %v1316_v28 }
  0xcb   :  { %1609 = vmatpush.bf16.msrb.mxu1 %v2684_v19  ;;  %v3033_v19 = vld [vmem:[#allocation5 + $0x538] sm:$0xf0]  ;;  %v3260_v46 = vor.u32 %v3696_v14, %v3259_v40  ;;  %v3670_v16 = vld [vmem:[#allocation8 + $0x4] sm:$0xf0]  ;;  %v3679_v14 = vld [vmem:[#allocation8 + $0x54] sm:$0xf] }
  0xcc   :  { %1634 = vmatpush.bf16.msra.mxu2 %v2956_v18  ;;  %v3638_v18 = vld [vmem:[#allocation5 + $0x52c] sm:$0xf]  ;;  %v3676_v27 = vld [vmem:[#allocation8 + $0x34] sm:$0xf0] }
  0xcd   :  { %1622 = vmatpush.bf16.msrb.mxu3 %v2812_v22  ;;  %v3203_v22 = vld [vmem:[#allocation8 + $0x60] sm:$0xf]  ;;  %v3036_v29 = vor.u32 %v3638_v18, %v3033_v19  ;;  %v3180_v61 = vor.u32 %v3676_v27, %v3179_v53  ;;  %v3672_v7 = vld [vmem:[#allocation8 + $0x14] sm:$0xf0]  ;;  %v3213_v19 = vld [vmem:[#allocation8 + $0x78] sm:$0xf0] }
  0xce   :  { %1647 = vmatpush.bf16.msrb.mxu0 %v3084_v39  ;;  %v3204_v31 = vor.u32 %v3682_v23, %v3203_v22  ;;  %v3688_v11 = vld [vmem:[#allocation8 + $0x94] sm:$0xf0]  ;;  %v3699_v22 = vld [vmem:[#allocation8 + $0xf4] sm:$0xf]  ;;  %v3277_v23 = vld [vmem:[#allocation8 + $0xf8] sm:$0xf0] }
  0xcf   :  { %1610 = vmatpush.bf16.msrb.mxu1 %v2668_v33  ;;  %v3017_v33 = vld [vmem:[#allocation5 + $0x518] sm:$0xf0]  ;;  %v3677_v53 = vld [vmem:[#allocation8 + $0x44] sm:$0xf]  ;;  %v3189_v27 = vld [vmem:[#allocation8 + $0x48] sm:$0xf0] }
  0xd0   :  { %1635 = vmatpush.bf16.msra.mxu2 %v2940_v32  ;;  %v3634_v32 = vld [vmem:[#allocation5 + $0x50c] sm:$0xf] }
  0xd1   :  { %1623 = vmatpush.bf16.msrb.mxu3 %v2796_v38  ;;  %v3268_v38 = vor.u32 %v3698_v26, %v3267_v25  ;;  %v1393_v39 = vpop.f32.mrf.mxu2  ;;  %v3020_v42 = vor.u32 %v3634_v32, %v3017_v33  ;;  %v3280_v32 = vor.u32 %v3699_v22, %v3277_v23  ;;  %v3229_v22 = vld [vmem:[#allocation8 + $0x98] sm:$0xf0] }
  0xd2   :  { %1648 = vmatpush.bf16.msrb.mxu0 %v3068_v58  ;;  %v3243_v58 = vld [vmem:[#allocation8 + $0xb0] sm:$0xf] }
  0xd3   :  { %1611 = vmatpush.bf16.msrb.mxu1 %v2652_v50  ;;  %v3244_v0 = vor.u32 %v3692_v59, %v3243_v58  ;;  %v3253_v58 = vld [vmem:[#allocation8 + $0xc8] sm:$0xf0]  ;;  %v3323_v59 = vld [vmem:[#allocation8 + $0x150] sm:$0xf] }
  0xd4   :  { %1636 = vmatpush.bf16.msra.mxu2 %v2924_v48  ;;  %v3694_v48 = vld [vmem:[#allocation8 + $0xc4] sm:$0xf0] }
  0xd5   :  { %1624 = vmatpush.bf16.msrb.mxu3 %v2780_v56  ;;  %v3252_v54 = vor.u32 %v3694_v48, %v3251_v47 }
  0xd6   :  { %1649 = vmatpush.bf16.msrb.mxu0 %v3052_v55  ;;  %v1367_v52 = vpop.f32.mrf.mxu0  ;;  %v3164_v55 = vor.u32 %v3672_v7, %v3163_v6 }
  0xd7   :  { %1612 = vmatpush.bf16.msrb.mxu1 %v2636_v8  ;;  %v1380_v56 = vpop.f32.mrf.mxu1 }
  0xd8   :  { %1637 = vmatpush.bf16.msra.mxu2 %v2908_v2  ;;  %v3690_v2 = vld [vmem:[#allocation8 + $0xa4] sm:$0xf0] }
  0xd9   :  { %1625 = vmatpush.bf16.msrb.mxu3 %v2764_v12  ;;  %v3236_v9 = vor.u32 %v3690_v2, %v3235_v1 }
  0xda   :  { %1613 = vmatmul.bf16.vlgmr.msrb.gmra.mxu1 %v3985_v51  ;;  %1650 = vmatpush.bf16.msrb.mxu0 %v3036_v29  ;;  %v3678_v51 = vld [vmem:[#allocation8 + $0x44] sm:$0xf0] }
  0xdb   :  { %2081 = vmatpush.bf16.msra.mxu1 %v3276_v20  ;;  %v3188_v50 = vor.u32 %v3678_v51, %v3187_v44  ;;  %v3219_v20 = vld [vmem:[#allocation8 + $0x80] sm:$0xf]  ;;  %v3695_v44 = vld [vmem:[#allocation8 + $0xd4] sm:$0xf]  ;;  %v3261_v51 = vld [vmem:[#allocation8 + $0xd8] sm:$0xf0] }
  0xdc   :  { %1638 = vmatpush.bf16.msra.mxu2 %v2892_v21  ;;  %1626 = vmatmul.bf16.vlgmr.msrb.gmra.mxu3 %v3989_v57  ;;  %v1342_v57 = vadd.f32 %v4029_v4, %v1329_v41  ;;  %v3171_v4 = vld [vmem:[#allocation8 + $0x20] sm:$0xf]  ;;  %v3686_v21 = vld [vmem:[#allocation8 + $0x84] sm:$0xf0]  ;;  %v3197_v41 = vld [vmem:[#allocation8 + $0x58] sm:$0xf0] }
  0xdd   :  { %2068 = vmatpush.bf16.msra.mxu3 %v3212_v17  ;;  %v3172_v3 = vor.u32 %v3674_v63, %v3171_v4  ;;  %v3683_v17 = vld [vmem:[#allocation8 + $0x74] sm:$0xf]  ;;  %v3220_v29 = vor.u32 %v3686_v21, %v3219_v20  ;;  %v3181_v63 = vld [vmem:[#allocation8 + $0x38] sm:$0xf0]  ;;  %v3710_v20 = vld [vmem:[#allocation8 + $0x144] sm:$0xf0] }
  0xde   :  { %1651 = vmatpush.bf16.msrb.mxu0 %v3020_v42  ;;  %v1355_v60 = vadd.f32 %v4031_v37, %v1342_v57  ;;  %v3227_v37 = vld [vmem:[#allocation8 + $0x90] sm:$0xf]  ;;  %v3216_v26 = vor.u32 %v3683_v17, %v3213_v19  ;;  %v3272_v42 = vor.u32 %v3697_v34, %v3269_v36  ;;  %v3331_v57 = vld [vmem:[#allocation8 + $0x160] sm:$0xf]  ;;  %v3675_v4 = vld [vmem:[#allocation8 + $0x34] sm:$0xf] }
  0xdf   :  { %1639 = vmatmul.bf16.vlgmr.msra.gmra.mxu2 %v4001_v30  ;;  %2082 = vmatpush.bf16.msra.mxu1 %v3268_v38  ;;  %v1395_v30 = vpop.f32.mrf.mxu2  ;;  %v1406_v8 = vpop.f32.mrf.mxu3  ;;  %v3228_v18 = vor.u32 %v3688_v11, %v3227_v37  ;;  %v315_v38 = vperm.slane %v4033_v49, 1  ;;  %v3184_v7 = vor.u32 %v3675_v4, %v3181_v63  ;;  %v3689_v37 = vld [vmem:[#allocation8 + $0xa4] sm:$0xf]  ;;  %v3237_v11 = vld [vmem:[#allocation8 + $0xa8] sm:$0xf0] }
  0xe0   :  { %1664 = vmatpush.bf16.msrb.mxu2 %v3148_v24  ;;  %v1368_v62 = vadd.f32 %v1367_v52, %v1355_v60  ;;  %v1382_v10 = vpop.f32.mrf.mxu1  ;;  %v3156_v24 = vor.u32 %v3670_v16, %v3155_v15  ;;  %v3200_v52 = vor.u32 %v3679_v14, %v3197_v41  ;;  %v3712_v60 = vld [vmem:[#allocation8 + $0x154] sm:$0xf0]  ;;  %v3165_v15 = vld [vmem:[#allocation8 + $0x18] sm:$0xf0]  ;;  %v3240_v17 = vor.u32 %v3689_v37, %v3237_v11  ;;  %v3315_v19 = vld [vmem:[#allocation8 + $0x140] sm:$0xf] }
  0xe1   :  { %2069 = vmatpush.bf16.msra.mxu3 %v3204_v31  ;;  %1652 = vmatmul.bf16.vlgmr.msrb.gmra.mxu0 %v4003_v35  ;;  %v1369_v35 = vpop.f32.mrf.mxu0  ;;  %v3205_v31 = vld [vmem:[#allocation8 + $0x68] sm:$0xf0]  ;;  %v1407_v47 = vadd.f32 %v1406_v8, %v315_v38  ;;  %v3324_v1 = vor.u32 %v3712_v60, %v3323_v59  ;;  %v3316_v23 = vor.u32 %v3710_v20, %v3315_v19  ;;  %v3299_v34 = vld [vmem:[#allocation8 + $0x120] sm:$0xf]  ;;  %v3706_v36 = vld [vmem:[#allocation8 + $0x124] sm:$0xf0] }
  0xe2   :  { %v1381_v5 = vadd.f32 %v1380_v56, %v1368_v62  ;;  %v3693_v56 = vld [vmem:[#allocation8 + $0xc4] sm:$0xf]  ;;  %v3192_v62 = vor.u32 %v3677_v53, %v3189_v27  ;;  %v3173_v8 = vld [vmem:[#allocation8 + $0x28] sm:$0xf0]  ;;  %v3283_v27 = vld [vmem:[#allocation8 + $0x100] sm:$0xf] }
  0xe3   :  { %2083 = vmatpush.bf16.msra.mxu1 %v3260_v46  ;;  %v3716_v46 = vld [vmem:[#allocation8 + $0x174] sm:$0xf0]  ;;  %v3673_v35 = vld [vmem:[#allocation8 + $0x24] sm:$0xf]  ;;  %v3221_v14 = vld [vmem:[#allocation8 + $0x88] sm:$0xf0] }
  0xe4   :  { %v1394_v13 = vadd.f32 %v1393_v39, %v1381_v5  ;;  %v3245_v5 = vld [vmem:[#allocation8 + $0xb8] sm:$0xf0]  ;;  %v3715_v59 = vld [vmem:[#allocation8 + $0x174] sm:$0xf]  ;;  %v3333_v4 = vld [vmem:[#allocation8 + $0x168] sm:$0xf0] }
  0xe5   :  { %2070 = vmatpush.bf16.msra.mxu3 %v3196_v43  ;;  %v3339_v43 = vld [vmem:[#allocation8 + $0x170] sm:$0xf]  ;;  %v3341_v60 = vld [vmem:[#allocation8 + $0x178] sm:$0xf0]  ;;  %v3730_v20 = vld [vmem:[#allocation8 + $0x1e4] sm:$0xf0] }
  0xe6   :  { %v1670_v25 = vmax.f32 %v1394_v13, 0.0  ;;  %v3340_v48 = vor.u32 %v3716_v46, %v3339_v43  ;;  %v3671_v13 = vld [vmem:[#allocation8 + $0x14] sm:$0xf]  ;;  %v3300_v43 = vor.u32 %v3706_v36, %v3299_v34  ;;  %v3291_v46 = vld [vmem:[#allocation8 + $0x110] sm:$0xf] }
  0xe7   :  { %2084 = vmatpush.bf16.msra.mxu1 %v3252_v54  ;;  %v1419_v12 = vpop.f32.mrf.mxu2  ;;  %v1408_v28 = vpop.f32.mrf.mxu3  ;;  %v3264_v54 = vor.u32 %v3695_v44, %v3261_v51  ;;  %v3309_v37 = vld [vmem:[#allocation8 + $0x138] sm:$0xf0] }
  0xe8   :  { %v4047_v39 = vpack.c.bf16 %v1670_v25, %v1670_v25  ;;  %2094 = vmatpush.bf16.msra.mxu2 %v3340_v48  ;;  %v3708_v25 = vld [vmem:[#allocation8 + $0x134] sm:$0xf0] }
  0xe9   :  { %2071 = vmatpush.bf16.msra.mxu3 %v3188_v50  ;;  %v3714_v50 = vld [vmem:[#allocation8 + $0x164] sm:$0xf0] }
  0xea   :  { %v3332_v30 = vor.u32 %v3714_v50, %v3331_v57 }
  0xeb   :  { %2085 = vmatpush.bf16.msra.mxu1 %v3244_v0  ;;  %v3256_v0 = vor.u32 %v3693_v56, %v3253_v58 }
  0xec   :  { %2095 = vmatpush.bf16.msra.mxu2 %v3332_v30 }
  0xed   :  { %2072 = vmatpush.bf16.msra.mxu3 %v3180_v61  ;;  %v1420_v61 = vadd.f32 %v1419_v12, %v1407_v47  ;;  %v3704_v47 = vld [vmem:[#allocation8 + $0x114] sm:$0xf0] }
  0xef   :  { %3152 = vmatmul.msk.bf16.vlgmr.msrb.gmra.mxu2 %vm1302_vm0, %v3997_v45  ;;  %2086 = vmatpush.bf16.msra.mxu1 %v3236_v9  ;;  %v3681_v45 = vld [vmem:[#allocation8 + $0x64] sm:$0xf]  ;;  %v1421_v33 = vpop.f32.mrf.mxu2 }
  0xf0   :  { %v3208_v40 = vor.u32 %v3681_v45, %v3205_v31  ;;  %2096 = vmatpush.bf16.msra.mxu2 %v3324_v1  ;;  %v3669_v45 = vld [vmem:[#allocation8 + $0x4] sm:$0xf]  ;;  %v3711_v1 = vld [vmem:[#allocation8 + $0x154] sm:$0xf] }
  0xf1   :  { %2073 = vmatpush.bf16.msra.mxu3 %v3172_v3  ;;  %v3691_v3 = vld [vmem:[#allocation8 + $0xb4] sm:$0xf] }
  0xf2   :  { %v3248_v9 = vor.u32 %v3691_v3, %v3245_v5 }
  0xf3   :  { %2087 = vmatpush.bf16.msra.mxu1 %v3228_v18  ;;  %v3687_v18 = vld [vmem:[#allocation8 + $0x94] sm:$0xf] }
  0xf4   :  { %2097 = vmatpush.bf16.msra.mxu2 %v3316_v23  ;;  %v3232_v33 = vor.u32 %v3687_v18, %v3229_v22  ;;  %v3395_v18 = vld [vmem:[#allocation8 + $0x1e0] sm:$0xf]  ;;  %v3703_v22 = vld [vmem:[#allocation8 + $0x114] sm:$0xf]  ;;  %v3293_v23 = vld [vmem:[#allocation8 + $0x118] sm:$0xf0] }
  0xf5   :  { %2074 = vmatpush.bf16.msra.mxu3 %v3164_v55  ;;  %v3176_v55 = vor.u32 %v3673_v35, %v3173_v8 }
  0xf6   :  { %v1432_v2 = vpop.f32.mrf.mxu0 }
  0xf7   :  { %2088 = vmatpush.bf16.msra.mxu1 %v3220_v29  ;;  %v1433_v6 = vadd.f32 %v1432_v2, %v1420_v61  ;;  %v1445_v10 = vpop.f32.mrf.mxu1  ;;  %v3168_v29 = vor.u32 %v3671_v13, %v3165_v15  ;;  %v3344_v61 = vor.u32 %v3715_v59, %v3341_v60  ;;  %v3325_v2 = vld [vmem:[#allocation8 + $0x158] sm:$0xf0]  ;;  %v3732_v13 = vld [vmem:[#allocation8 + $0x1f4] sm:$0xf0] }
  0xf8   :  { %v3328_v5 = vor.u32 %v3711_v1, %v3325_v2 }
  0xf9   :  { %2075 = vmatpush.bf16.msra.mxu3 %v3156_v24  ;;  %v1446_v12 = vadd.f32 %v1445_v10, %v1433_v6  ;;  %v3307_v24 = vld [vmem:[#allocation8 + $0x130] sm:$0xf]  ;;  %v3317_v6 = vld [vmem:[#allocation8 + $0x148] sm:$0xf0]  ;;  %v3707_v10 = vld [vmem:[#allocation8 + $0x134] sm:$0xf] }
  0xfa   :  { %v3308_v31 = vor.u32 %v3708_v25, %v3307_v24  ;;  %v3387_v24 = vld [vmem:[#allocation8 + $0x1d0] sm:$0xf]  ;;  %v3728_v25 = vld [vmem:[#allocation8 + $0x1d4] sm:$0xf0] }
  0xfb   :  { %2133 = vmatpush.bf16.msrb.mxu1 %v3280_v32  ;;  %v3157_v32 = vld [vmem:[#allocation8 + $0x8] sm:$0xf0] }
  0xfc   :  { %2076 = vmatmul.bf16.vlgmr.msra.gmra.mxu3 %v4047_v39  ;;  %2098 = vmatpush.bf16.msra.mxu2 %v3308_v31  ;;  %v3388_v31 = vor.u32 %v3728_v25, %v3387_v24  ;;  %v3719_v25 = vld [vmem:[#allocation8 + $0x194] sm:$0xf] }
  0xfd   :  { %2120 = vmatpush.bf16.msrb.mxu3 %v3216_v26 }
  0xfe   :  { %v1434_v21 = vpop.f32.mrf.mxu0 }
  0xff   :  { %2134 = vmatpush.bf16.msrb.mxu1 %v3272_v42  ;;  %v1458_v16 = vpop.f32.mrf.mxu3  ;;  %v1447_v38 = vpop.f32.mrf.mxu1  ;;  %v3160_v42 = vor.u32 %v3669_v45, %v3157_v32  ;;  %v3396_v21 = vor.u32 %v3730_v20, %v3395_v18  ;;  %v3296_v45 = vor.u32 %v3703_v22, %v3293_v23  ;;  %v3701_v32 = vld [vmem:[#allocation8 + $0x104] sm:$0xf]  ;;  %v3373_v18 = vld [vmem:[#allocation8 + $0x1b8] sm:$0xf0]  ;;  %v3365_v22 = vld [vmem:[#allocation8 + $0x1a8] sm:$0xf0] }
 0x100   :  { %v1459_v26 = vadd.f32 %v1458_v16, %v1446_v12  ;;  %2099 = vmatpush.bf16.msra.mxu2 %v3300_v43  ;;  %v3312_v12 = vor.u32 %v3707_v10, %v3309_v37  ;;  %v3705_v16 = vld [vmem:[#allocation8 + $0x124] sm:$0xf]  ;;  %v317_v23 = vperm.slane %v4033_v49, 3 }
 0x101   :  { %2121 = vmatpush.bf16.msrb.mxu3 %v3208_v40  ;;  %v3685_v40 = vld [vmem:[#allocation8 + $0x84] sm:$0xf] }
 0x102   :  { %v1471_v28 = vpop.f32.mrf.mxu2  ;;  %v3224_v44 = vor.u32 %v3685_v40, %v3221_v14  ;;  %v3379_v40 = vld [vmem:[#allocation8 + $0x1c0] sm:$0xf]  ;;  %v3726_v14 = vld [vmem:[#allocation8 + $0x1c4] sm:$0xf0] }
 0x103   :  { %2135 = vmatpush.bf16.msrb.mxu1 %v3264_v54  ;;  %v1472_v41 = vadd.f32 %v1471_v28, %v1459_v26  ;;  %v3702_v54 = vld [vmem:[#allocation8 + $0x104] sm:$0xf0]  ;;  %v316_v26 = vperm.slane %v4033_v49, 2 }
 0x104   :  { %v3284_v30 = vor.u32 %v3702_v54, %v3283_v27 }
 0x105   :  { %2122 = vmatpush.bf16.msrb.mxu3 %v3200_v52  ;;  %v3292_v52 = vor.u32 %v3704_v47, %v3291_v46 }
 0x106   :  { %v1484_v48 = vpop.f32.mrf.mxu0 }
 0x107   :  { %2136 = vmatpush.bf16.msrb.mxu1 %v3256_v0  ;;  %v1460_v51 = vpop.f32.mrf.mxu3  ;;  %v1485_v57 = vadd.f32 %v1484_v48, %v1472_v41  ;;  %2100 = vmatpush.bf16.msra.mxu2 %v3292_v52 }
 0x108   :  { %v3724_v51 = vld [vmem:[#allocation8 + $0x1b4] sm:$0xf0] }
 0x109   :  { %2123 = vmatpush.bf16.msrb.mxu3 %v3192_v62  ;;  %v1671_v53 = vmax.f32 %v1485_v57, 0.0  ;;  %v3713_v62 = vld [vmem:[#allocation8 + $0x164] sm:$0xf]  ;;  %v3363_v57 = vld [vmem:[#allocation8 + $0x1a0] sm:$0xf] }
 0x10a   :  { %v1473_v50 = vpop.f32.mrf.mxu2  ;;  %v3336_v63 = vor.u32 %v3713_v62, %v3333_v4  ;;  %v3347_v4 = vld [vmem:[#allocation8 + $0x180] sm:$0xf] }
 0x10b   :  { %2137 = vmatpush.bf16.msrb.mxu1 %v3248_v9  ;;  %v1675_v56 = vpack.c.bf16 %v1671_v53, %v1671_v53  ;;  %2101 = vmatpush.bf16.msra.mxu2 %v3284_v30  ;;  %v3722_v50 = vld [vmem:[#allocation8 + $0x1a4] sm:$0xf0]  ;;  %v3720_v30 = vld [vmem:[#allocation8 + $0x194] sm:$0xf0] }
 0x10c   :  { %v3364_v53 = vor.u32 %v3722_v50, %v3363_v57 }
 0x10d   :  { %2124 = vmatpush.bf16.msrb.mxu3 %v3184_v7  ;;  %2089 = vmatmul.bf16.vlgmr.msra.gmra.mxu1 %v1675_v56 }
 0x10e   :  { %v1486_v58 = vpop.f32.mrf.mxu0 }
 0x10f   :  { %2138 = vmatpush.bf16.msrb.mxu1 %v3240_v17  ;;  %2146 = vmatpush.bf16.msrb.mxu2 %v3344_v61  ;;  %v3301_v17 = vld [vmem:[#allocation8 + $0x128] sm:$0xf0] }
 0x110   :  { %v3304_v19 = vor.u32 %v3705_v16, %v3301_v17  ;;  %v3723_v17 = vld [vmem:[#allocation8 + $0x1b4] sm:$0xf] }
 0x111   :  { %2125 = vmatpush.bf16.msrb.mxu3 %v3176_v55  ;;  %v3403_v55 = vld [vmem:[#allocation8 + $0x1f0] sm:$0xf]  ;;  %v3376_v20 = vor.u32 %v3723_v17, %v3373_v18  ;;  %v3742_v17 = vld [vmem:[#allocation10 + $0x48] sm:$0xff] }
 0x112   :  { %v3404_v15 = vor.u32 %v3732_v13, %v3403_v55  ;;  %v3725_v13 = vld [vmem:[#allocation8 + $0x1c4] sm:$0xf] }
 0x113   :  { %2139 = vmatpush.bf16.msrb.mxu1 %v3232_v33  ;;  %2147 = vmatpush.bf16.msrb.mxu2 %v3336_v63  ;;  %v3285_v33 = vld [vmem:[#allocation8 + $0x108] sm:$0xf0]  ;;  %v3718_v63 = vld [vmem:[#allocation8 + $0x184] sm:$0xf0] }
 0x114   :  { %2107 = vmatpush.bf16.msra.mxu0 %v3404_v15  ;;  %v3288_v38 = vor.u32 %v3701_v32, %v3285_v33  ;;  %v3348_v1 = vor.u32 %v3718_v63, %v3347_v4  ;;  %v3381_v15 = vld [vmem:[#allocation8 + $0x1c8] sm:$0xf0] }
 0x115   :  { %2126 = vmatpush.bf16.msrb.mxu3 %v3168_v29  ;;  %v3384_v16 = vor.u32 %v3725_v13, %v3381_v15  ;;  %v3744_v13 = vld [vmem:[#allocation10 + $0x58] sm:$0xff] }
 0x117   :  { %2140 = vmatpush.bf16.msrb.mxu1 %v3224_v44  ;;  %v1497_v0 = vpop.f32.mrf.mxu1  ;;  %2148 = vmatpush.bf16.msrb.mxu2 %v3328_v5  ;;  %v3371_v44 = vld [vmem:[#allocation8 + $0x1b0] sm:$0xf]  ;;  %v3405_v5 = vld [vmem:[#allocation8 + $0x1f8] sm:$0xf0] }
 0x118   :  { %2108 = vmatpush.bf16.msra.mxu0 %v3396_v21  ;;  %v1498_v36 = vadd.f32 %v1497_v0, %v316_v26  ;;  %v3372_v48 = vor.u32 %v3724_v51, %v3371_v44  ;;  %v3721_v21 = vld [vmem:[#allocation8 + $0x1a4] sm:$0xf]  ;;  %v3357_v26 = vld [vmem:[#allocation8 + $0x198] sm:$0xf0] }
 0x119   :  { %2127 = vmatpush.bf16.msrb.mxu3 %v3160_v42  ;;  %v3380_v42 = vor.u32 %v3726_v14, %v3379_v40  ;;  %v3368_v24 = vor.u32 %v3721_v21, %v3365_v22 }
 0x11a   :  { %v1523_v3 = vpop.f32.mrf.mxu0 }
 0x11c   :  { %2128 = vmatmul.bf16.vlgmr.msrb.gmra.mxu3 %v4047_v39  ;;  %v3709_v39 = vld [vmem:[#allocation8 + $0x144] sm:$0xf]  ;;  %2109 = vmatpush.bf16.msra.mxu0 %v3388_v31 }
 0x11d   :  { %v3320_v35 = vor.u32 %v3709_v39, %v3317_v6  ;;  %2141 = vmatmul.bf16.vlgmr.msrb.gmra.mxu1 %v1675_v56  ;;  %v3355_v56 = vld [vmem:[#allocation8 + $0x190] sm:$0xf] }
 0x11e   :  { %v3356_v60 = vor.u32 %v3720_v30, %v3355_v56 }
 0x11f   :  { %v1499_v7 = vpop.f32.mrf.mxu1  ;;  %v1510_v9 = vpop.f32.mrf.mxu3  ;;  %2149 = vmatpush.bf16.msrb.mxu2 %v3320_v35  ;;  %v3397_v35 = vld [vmem:[#allocation8 + $0x1e8] sm:$0xf0] }
 0x120   :  { %v1511_v41 = vadd.f32 %v1510_v9, %v1498_v36  ;;  %2110 = vmatpush.bf16.msra.mxu0 %v3380_v42  ;;  %v3729_v7 = vld [vmem:[#allocation8 + $0x1e4] sm:$0xf]  ;;  %v3349_v36 = vld [vmem:[#allocation8 + $0x188] sm:$0xf0] }
 0x121   :  { %v3400_v9 = vor.u32 %v3729_v7, %v3397_v35  ;;  %v3747_v7 = vld [vmem:[#allocation10 + $0x70] sm:$0xff]  ;;  %v3736_v35 = vld [vmem:[#allocation10 + $0x18] sm:$0xff] }
 0x122   :  { %v1536_v8 = vpop.f32.mrf.mxu2  ;;  %v1525_v11 = vpop.f32.mrf.mxu0  ;;  %v1524_v46 = vadd.f32 %v1523_v3, %v1511_v41  ;;  %v3731_v3 = vld [vmem:[#allocation8 + $0x1f4] sm:$0xf] }
 0x123   :  { %2150 = vmatpush.bf16.msrb.mxu2 %v3312_v12  ;;  %v3408_v39 = vor.u32 %v3731_v3, %v3405_v5  ;;  %v3727_v11 = vld [vmem:[#allocation8 + $0x1d4] sm:$0xf]  ;;  %v3389_v12 = vld [vmem:[#allocation8 + $0x1d8] sm:$0xf0]  ;;  %v3738_v5 = vld [vmem:[#allocation10 + $0x28] sm:$0xff] }
 0x124   :  { %2111 = vmatpush.bf16.msra.mxu0 %v3372_v48  ;;  %v1537_v52 = vadd.f32 %v1536_v8, %v1524_v46  ;;  %v3392_v55 = vor.u32 %v3727_v11, %v3389_v12  ;;  %v3739_v3 = vld [vmem:[#allocation10 + $0x30] sm:$0xff]  ;;  %v3733_v12 = vld [vmem:[#allocation10] sm:$0xff] }
 0x127   :  { %v1512_v29 = vpop.f32.mrf.mxu3  ;;  %2151 = vmatpush.bf16.msrb.mxu2 %v3304_v19 }
 0x128   :  { %2112 = vmatpush.bf16.msra.mxu0 %v3364_v53 }
 0x12a   :  { %v1538_v28 = vpop.f32.mrf.mxu2  ;;  %v1575_v34 = vpop.f32.mrf.mxu0 }
 0x12b   :  { %2152 = vmatpush.bf16.msrb.mxu2 %v3296_v45  ;;  %v3360_v28 = vor.u32 %v3719_v25, %v3357_v26 }
 0x12c   :  { %2113 = vmatpush.bf16.msra.mxu0 %v3356_v60 }
 0x12f   :  { %2153 = vmatpush.bf16.msrb.mxu2 %v3288_v38 }
 0x130   :  { %2114 = vmatpush.bf16.msra.mxu0 %v3348_v1 }
 0x132   :  { %v1577_v43 = vpop.f32.mrf.mxu0 }
 0x134   :  { %2159 = vmatpush.bf16.msrb.mxu0 %v3408_v39  ;;  %v3737_v39 = vld [vmem:[#allocation10 + $0x20] sm:$0xff] }
 0x137   :  { %v1549_v47 = vpop.f32.mrf.mxu1 }
 0x138   :  { %v1550_v27 = vadd.f32 %v1549_v47, %v1537_v52  ;;  %2160 = vmatpush.bf16.msrb.mxu0 %v3400_v9  ;;  %v3735_v9 = vld [vmem:[#allocation10 + $0x10] sm:$0xff] }
 0x13c   :  { %2161 = vmatpush.bf16.msrb.mxu0 %v3392_v55  ;;  %v3745_v55 = vld [vmem:[#allocation10 + $0x60] sm:$0xff] }
 0x13e   :  { %v1601_v62 = vpop.f32.mrf.mxu0 }
 0x13f   :  { %v1562_v54 = vpop.f32.mrf.mxu3  ;;  %v1551_v59 = vpop.f32.mrf.mxu1 }
 0x140   :  { %v1563_v58 = vadd.f32 %v1562_v54, %v1550_v27  ;;  %2162 = vmatpush.bf16.msrb.mxu0 %v3384_v16  ;;  %v1742_v27 = vld [vmem:[%s4066_s4] sm:$0x3]  ;;  %v3743_v16 = vld [vmem:[#allocation10 + $0x50] sm:$0xff] }
 0x141   :  { %v1744_v54 = vperm.slane %v1742_v27, 0 }
 0x142   :  { %v1588_v61 = vpop.f32.mrf.mxu2  ;;  %v1576_v0 = vadd.f32 %v1575_v34, %v1563_v58  ;;  %v3717_v34 = vld [vmem:[#allocation8 + $0x184] sm:$0xf] }
 0x143   :  { %v1589_v45 = vadd.f32 %v1588_v61, %v317_v23  ;;  %v3352_v40 = vor.u32 %v3717_v34, %v3349_v36  ;;  %v1745_v61 = vperm.slane %v1742_v27, 1  ;;  %v3761_v34 = vld [vmem:[%s4068_s6] ss:$0 sm:$0xff] }
 0x144   :  { %v1672_v2 = vmax.f32 %v1576_v0, 0.0  ;;  %2163 = vmatpush.bf16.msrb.mxu0 %v3376_v20 }
 0x145   :  { %v1602_v38 = vadd.f32 %v1601_v62, %v1589_v45 }
 0x146   :  { %v1676_v6 = vpack.c.bf16 %v1672_v2, %v1672_v2  ;;  %v1603_v37 = vpop.f32.mrf.mxu0  ;;  %v3740_v2 = vld [vmem:[#allocation10 + $0x38] sm:$0xff] }
 0x147   :  { %v1564_v8 = vpop.f32.mrf.mxu3  ;;  %2308 = vmatpush.bf16.msra.mxu3 %v3740_v2  ;;  %v3746_v37 = vld [vmem:[#allocation10 + $0x68] sm:$0xff] }
 0x148   :  { %2102 = vmatmul.bf16.vlgmr.msra.gmra.mxu2 %v1676_v6  ;;  %2164 = vmatpush.bf16.msrb.mxu0 %v3368_v24 }
 0x14a   :  { %v1590_v10 = vpop.f32.mrf.mxu2 }
 0x14b   :  { %2309 = vmatpush.bf16.msra.mxu3 %v3739_v3  ;;  %v3734_v10 = vld [vmem:[#allocation10 + $0x8] sm:$0xff] }
 0x14c   :  { %2165 = vmatpush.bf16.msrb.mxu0 %v3360_v28 }
 0x14f   :  { %2310 = vmatpush.bf16.msra.mxu3 %v3738_v5 }
 0x150   :  { %2166 = vmatpush.bf16.msrb.mxu0 %v3352_v40 }
 0x153   :  { %2311 = vmatpush.bf16.msra.mxu3 %v3737_v39 }
 0x157   :  { %v1614_v19 = vpop.f32.mrf.mxu1  ;;  %2312 = vmatpush.bf16.msra.mxu3 %v3736_v35 }
 0x158   :  { %2154 = vmatmul.bf16.vlgmr.msrb.gmra.mxu2 %v1676_v6  ;;  %v1615_v14 = vadd.f32 %v1614_v19, %v1602_v38  ;;  %v3748_v6 = vld [vmem:[#allocation10 + $0x78] sm:$0xff]  ;;  %v3741_v19 = vld [vmem:[#allocation10 + $0x40] sm:$0xff] }
 0x159   :  { %2321 = vmatpush.bf16.msra.mxu1 %v3748_v6 }
 0x15b   :  { %2313 = vmatpush.bf16.msra.mxu3 %v3735_v9 }
 0x15d   :  { %2322 = vmatpush.bf16.msra.mxu1 %v3747_v7 }
 0x15e   :  { %v1653_v33 = vpop.f32.mrf.mxu0 }
 0x15f   :  { %v1627_v29 = vpop.f32.mrf.mxu3  ;;  %v1616_v31 = vpop.f32.mrf.mxu1  ;;  %2314 = vmatpush.bf16.msra.mxu3 %v3734_v10 }
 0x160   :  { %v1628_v42 = vadd.f32 %v1627_v29, %v1615_v14 }
 0x161   :  { %2323 = vmatpush.bf16.msra.mxu1 %v3746_v37 }
 0x162   :  { %v1640_v32 = vpop.f32.mrf.mxu2 }
 0x163   :  { %v1641_v44 = vadd.f32 %v1640_v32, %v1628_v42  ;;  %2315 = vmatpush.bf16.msra.mxu3 %v3733_v12 }
 0x165   :  { %v1654_v51 = vadd.f32 %v1653_v33, %v1641_v44  ;;  %2324 = vmatpush.bf16.msra.mxu1 %v3745_v55 }
 0x166   :  { %v1655_v43 = vpop.f32.mrf.mxu0 }
 0x167   :  { %v1629_v41 = vpop.f32.mrf.mxu3 }
 0x169   :  { %2325 = vmatpush.bf16.msra.mxu1 %v3744_v13 }
 0x16a   :  { %v1642_v49 = vpop.f32.mrf.mxu2 }
 0x16d   :  { %2326 = vmatpush.bf16.msra.mxu1 %v3743_v16 }
 0x171   :  { %2327 = vmatpush.bf16.msra.mxu1 %v3742_v17 }
 0x172   :  { %v1666_v46 = vpop.f32.mrf.mxu2 }
 0x173   :  { %v1667_v47 = vadd.f32 %v1666_v46, %v1654_v51 }
 0x175   :  { %v1673_v48 = vmax.f32 %v1667_v47, 0.0  ;;  %2328 = vmatpush.bf16.msra.mxu1 %v3741_v19 }
 0x177   :  { %v1677_v57 = vpack.c.bf16 %v1673_v48, %v1673_v48 }
 0x179   :  { %2115 = vmatmul.bf16.vlgmr.msra.gmra.mxu0 %v1677_v57 }
 0x17a   :  { %v1668_v50 = vpop.f32.mrf.mxu2 }
 0x17f   :  { %v2077_v52 = vpop.f32.mrf.mxu3 }
 0x180   :  { %v2078_v56 = vadd.f32 %v2077_v52, %v1744_v54 }
 0x187   :  { %v2079_v53 = vpop.f32.mrf.mxu3 }
 0x189   :  { %2167 = vmatmul.bf16.vlgmr.msrb.gmra.mxu0 %v1677_v57 }
 0x18a   :  { %v2090_v30 = vpop.f32.mrf.mxu1 }
 0x18b   :  { %v2091_v58 = vadd.f32 %v2090_v30, %v2078_v56 }
 0x192   :  { %v2092_v60 = vpop.f32.mrf.mxu1 }
 0x19a   :  { %v2142_v63 = vpop.f32.mrf.mxu1 }
 0x19f   :  { %v2129_v59 = vpop.f32.mrf.mxu3 }
 0x1a0   :  { %v2130_v4 = vadd.f32 %v2129_v59, %v1745_v61 }
 0x1a2   :  { %v2143_v0 = vadd.f32 %v2142_v63, %v2130_v4  ;;  %v2144_v1 = vpop.f32.mrf.mxu1 }
 0x1a7   :  { %v2131_v62 = vpop.f32.mrf.mxu3 }
 0x1cb   :  { %v2103_v8 = vpop.f32.mrf.mxu2 }
 0x1cc   :  { %v2104_v20 = vadd.f32 %v2103_v8, %v2091_v58 }
 0x1d3   :  { %v2105_v11 = vpop.f32.mrf.mxu2 }
 0x1db   :  { %v2155_v15 = vpop.f32.mrf.mxu2 }
 0x1dc   :  { %v2156_v26 = vadd.f32 %v2155_v15, %v2143_v0 }
 0x1e3   :  { %v2157_v18 = vpop.f32.mrf.mxu2 }
 0x1f6   :  { %v2116_v21 = vpop.f32.mrf.mxu0 }
 0x1f7   :  { %v2117_v22 = vadd.f32 %v2116_v21, %v2104_v20 }
 0x1f9   :  { %v2172_v23 = vmax.f32 %v2117_v22, 0.0 }
 0x1fb   :  { %v2174_v24 = vpack.c.bf16 %v2172_v23, %v2172_v23 }
 0x1fd   :  { %2316 = vmatmul.bf16.vlgmr.msra.gmra.mxu3 %v2174_v24 }
 0x1fe   :  { %v2118_v25 = vpop.f32.mrf.mxu0 }
 0x206   :  { %v2168_v28 = vpop.f32.mrf.mxu0 }
 0x207   :  { %v2169_v29 = vadd.f32 %v2168_v28, %v2156_v26 }
 0x209   :  { %v2173_v45 = vmax.f32 %v2169_v29, 0.0 }
 0x20b   :  { %v2175_v31 = vpack.c.bf16 %v2173_v45, %v2173_v45 }
 0x20d   :  { %2329 = vmatmul.bf16.vlgmr.msra.gmra.mxu1 %v2175_v31 }
 0x20e   :  { %v2170_v32 = vpop.f32.mrf.mxu0 }
 0x280   :  { %v2317_v33 = vpop.f32.mrf.mxu3 }
 0x281   :  { %v2318_v38 = vadd.f32 %v3761_v34, %v2317_v33 }
 0x288   :  { %v2319_v36 = vpop.f32.mrf.mxu3 }
 0x28a   :  { %v2330_v40 = vpop.f32.mrf.mxu1 }
 0x28b   :  { %v2331_v14 = vadd.f32 %v2330_v40, %v2318_v38 }
 0x28d   :  { %2334 = vmax.xlane.f32.xlu0 %v2331_v14 }
 0x292   :  { %v2332_v41 = vpop.f32.mrf.mxu1 }
 0x300   :  { %v2335_v42 = vpop.xlane.xlu0 %2334 }
 0x301   :  { %v2336_v49 = vsub.f32 %v2331_v14, %v2335_v42 }
 0x303   :  { %v2337_v43 = vmul.f32 1.442695, %v2336_v49 }
 0x305   :  { %3762 = vpow2.f32 %v2337_v43 }
 0x30b   :  { %v3763_v44 = vpop.eup %3762 }
 0x30c   :  { %2339 = vadd.xlane.f32.xlu0 %v3763_v44 }
 0x37f   :  { %v2340_v51 = vpop.xlane.xlu0 %2339 }
 0x380   :  { %3764 = vlog2.f32 %v2340_v51 }
 0x386   :  { %v3765_v46 = vpop.eup %3764 }
 0x387   :  { %v2342_v47 = vmul.f32 0.6931472, %v3765_v46 }
 0x389   :  { %v2343_v48 = vsub.f32 %v2336_v49, %v2342_v47 }
 0x38b   :  { %v2344_v57 = vpack.c.bf16 %v2343_v48, %v2343_v48 }
 0x38d   :  { %2345 = vst [vmem:[#allocation11] sm:$0xf] %v2344_v57 }
 0x38e   :  { %2356 = dma.vmem_to_hbm [thread:$0]  %s2352_s8, 64, %s2354_s10, [#allocation4]  }
 0x38f   :  { %3916 = dma.done.wait [#allocation4], 64  }
 0x390   :  { %3917 = vsyncadd [#allocation4], 4294967232 }
 0x391   :  { %2361 = vsyncpa [#allocation3], 1 }
 0x392   :  { %2362 = vsyncpa [#allocation6], 1 }
 0x393   :  { %2363 = vsyncpa [#allocation9], 1 }
 0x394   :  { %2364 = vsyncpa [#allocation4], 1 }

</bundles_post_ra>
